<compile_context>
chip_gen: v7x
topology: tpu7x:2x2x1
jax: 0.10.0
libtpu: 0.0.40
codegen_flags: <defaults>
</compile_context>

<pallas_src>
import math
import jax
import jax.numpy as jnp
from jax.experimental import pallas as pl
from jax.experimental.pallas import tpu as pltpu

# ---- model hyper-parameters (small, consistent with the module) ----
D_MODEL = 32
NHEAD = 4
HEAD_DIM = D_MODEL // NHEAD
DIM_FF = 64
LN_EPS = 1e-5
# Per-head projection block: E weight rows + 1 bias row, zero-padded to a
# multiple of 8 sublanes so every in-kernel weight slice is sublane-aligned.
AUG = 8 * pl.cdiv(D_MODEL + 1, 8)          # = 40

# bias / LayerNorm rows inside the misc slab (offsets relative to row D_MODEL)
_R_N1G, _R_N1B, _R_BO, _R_N2G, _R_N2B, _R_B1, _R_B2 = range(7)


def _layer_norm(x, gamma, beta):
    mu = jnp.mean(x, axis=-1, keepdims=True)
    var = jnp.mean((x - mu) ** 2, axis=-1, keepdims=True)
    return (x - mu) * jax.lax.rsqrt(var + LN_EPS) * gamma + beta


def _gelu(x):
    # exact (erf-based) GELU, matching torch.nn.GELU() default
    return 0.5 * x * (1.0 + jax.lax.erf(x * (1.0 / math.sqrt(2.0))))


def graphormer_layer_kernel(x_ref, sb_ref, db_ref, wqk_ref, wvo2_ref, misc_ref,
                            out_ref):
    R, E = x_ref.shape                    # R = bt*S rows (batch folded on sublanes)
    BT, S, _ = sb_ref.shape
    d = wqk_ref.shape[1]                  # head dim
    H = E // d                            # num heads
    aug = wqk_ref.shape[0] // (2 * H)     # rows per per-head projection block
    FF = misc_ref.shape[1]

    x = x_ref[...]                        # [R, E]
    lnb = misc_ref[E:E + 8, :]            # bias / LN parameter rows (aligned load)

    def row(r):                           # (1, E) parameter row
        return lnb[r:r + 1, :E]

    # -------- Pre-LN #1 + Graphormer multi-head self-attention ---------------
    xn = _layer_norm(x, row(_R_N1G), row(_R_N1B))
    # Augmented activations: the trailing ones column picks up each head's
    # projection bias (stored in row E of its weight block; rows E+1.. are 0).
    xn1 = jnp.concatenate([xn, jnp.ones((R, aug - E), jnp.float32)], axis=-1)

    def qk(pi, h):                        # [R, d] = xn @ W_{pi,h} + b_{pi,h}
        base = (pi * H + h) * aug
        return jnp.dot(xn1, wqk_ref[base:base + aug, :],
                       preferred_element_type=jnp.float32)

    q = [qk(0, h) for h in range(H)]      # 1/sqrt(d) pre-folded into q blocks
    k = [qk(1, h) for h in range(H)]
    # Fused V*W_out per head: [R, E] (out_proj folded into weights in wrapper).
    vo = [jnp.dot(xn1, wvo2_ref[h * aug:(h + 1) * aug, :],
                  preferred_element_type=jnp.float32) for h in range(H)]

    # One stacked softmax over every (batch, head) score block: [BT*H*S, S].
    bias = sb_ref[...] + db_ref[...]      # [BT, S, S], shared across heads
    s_blocks = []
    for b in range(BT):
        bias_b = bias[b]
        rows_b = slice(b * S, (b + 1) * S)          # sublane-aligned slice
        for h in range(H):
            s_blocks.append(jax.lax.dot_general(
                q[h][rows_b, :], k[h][rows_b, :], (((1,), (1,)), ((), ())),
                preferred_element_type=jnp.float32) + bias_b)      # [S, S]
    scores = jnp.concatenate(s_blocks, axis=0)                     # [BT*H*S, S]
    m = jnp.max(scores, axis=-1, keepdims=True)
    e = jnp.exp(scores - m)
    p = e * pl.reciprocal(jnp.sum(e, axis=-1, keepdims=True), approx=True)

    # attn rows for batch b = sum_h P_{b,h} @ (V_h W_out_h); no lane concat,
    # no separate output projection matmul.
    attn_blocks = []
    for b in range(BT):
        rows_b = slice(b * S, (b + 1) * S)
        acc = None
        for h in range(H):
            pr = p[(b * H + h) * S:(b * H + h + 1) * S, :]          # [S, S]
            contrib = jnp.dot(pr, vo[h][rows_b, :],
                              preferred_element_type=jnp.float32)   # [S, E]
            acc = contrib if acc is None else acc + contrib
        attn_blocks.append(acc)
    attn = jnp.concatenate(attn_blocks, axis=0) + row(_R_BO)        # [R, E]

    x1 = x + attn                                   # dropout1 == identity (eval)

    # -------- Pre-LN #2 + feed-forward ----------------------------------------
    xn2 = _layer_norm(x1, row(_R_N2G), row(_R_N2B))
    h1 = _gelu(jnp.dot(xn2, misc_ref[0:E, :], preferred_element_type=jnp.float32)
               + lnb[_R_B1:_R_B1 + 1, :])
    ffn = (jnp.dot(h1, wvo2_ref[H * aug:H * aug + FF, :],
                   preferred_element_type=jnp.float32)
           + row(_R_B2))
    # TODO(synk): adapter branch (use_adapter=True) not implemented (module default is False).

    out_ref[...] = (x1 + ffn).astype(out_ref.dtype)  # dropout2 == identity (eval)


def _pack_params(params):
    """Pack the 16 module parameters into 3 slabs (fewer DMA descriptors)."""
    (n1g, n1b, wq, bq, wk, bk, wv, bv, wo, bo, n2g, n2b, w1, b1, w2, b2) = params
    f32 = jnp.float32
    scale = HEAD_DIM ** -0.5

    # (a) tall per-head Q/K slab: 2*NHEAD blocks of [AUG, HEAD_DIM]
    qk_blocks = []
    for w, bvec, sc in ((wq, bq, scale), (wk, bk, 1.0)):
        for h in range(NHEAD):
            cols = slice(h * HEAD_DIM, (h + 1) * HEAD_DIM)
            blk = jnp.zeros((AUG, HEAD_DIM), f32)
            blk = blk.at[:D_MODEL, :].set(w[:, cols].astype(f32) * sc)
            blk = blk.at[D_MODEL, :].set(bvec[cols].astype(f32) * sc)
            qk_blocks.append(blk)
    w_qk = jnp.concatenate(qk_blocks, axis=0)                   # [2*NHEAD*AUG, d]

    # (b) per-head fused V*W_out blocks + linear2 on the sublane axis:
    #     concat_h(P_h @ V_h) @ W_out == sum_h P_h @ (V_h @ W_out_h), so the
    #     output projection is folded into the V weights here (free, offline).
    vo_blocks = []
    for h in range(NHEAD):
        cols = slice(h * HEAD_DIM, (h + 1) * HEAD_DIM)
        wvo = wv[:, cols].astype(f32) @ wo[cols, :].astype(f32)  # [E, E]
        bvo = bv[cols].astype(f32) @ wo[cols, :].astype(f32)     # [E]
        blk = jnp.zeros((AUG, D_MODEL), f32)
        blk = blk.at[:D_MODEL, :].set(wvo)
        blk = blk.at[D_MODEL, :].set(bvo)
        vo_blocks.append(blk)
    w_vo2 = jnp.concatenate(vo_blocks + [w2.astype(f32)], axis=0)  # [NHEAD*AUG+FF, E]

    # (c) misc slab: linear1 weight + every remaining bias/LN vector as a row.
    misc = jnp.zeros((D_MODEL + 8, DIM_FF), f32)
    misc = misc.at[:D_MODEL, :].set(w1.astype(f32))
    for r, vec in ((_R_N1G, n1g), (_R_N1B, n1b), (_R_BO, bo),
                   (_R_N2G, n2g), (_R_N2B, n2b), (_R_B2, b2)):
        misc = misc.at[D_MODEL + r, :D_MODEL].set(vec.astype(f32))
    misc = misc.at[D_MODEL + _R_B1, :].set(b1.astype(f32))
    return w_qk, w_vo2, misc


def _pick_batch_tile(B):
    """Largest divisor of B that still leaves >=2 grid steps: keeps both v7x
    TensorCores busy via the 'parallel' grid axis while fusing batch elements
    per step (amortizes pipeline overhead on single-TC v5e/v6e too)."""
    if B <= 1:
        return 1
    bt = B // 2
    while B % bt:
        bt -= 1
    return bt


def graphormer_transformer_layer(src, spatial_bias, directional_bias, params,
                                 batch_tile=None):
    B, S, E = src.shape
    assert E == D_MODEL and E % NHEAD == 0
    bt = _pick_batch_tile(B) if batch_tile is None else batch_tile
    assert B % bt == 0, "batch must be divisible by the batch tile"
    w_qk, w_vo2, misc = _pack_params(params)

    # Fold batch onto the sublane axis: each grid step works on [bt*S, E] rows.
    src2 = src.reshape(B * S, E)
    rows = bt * S

    def const_spec(arr):
        n = arr.ndim
        return pl.BlockSpec(arr.shape, lambda i: (0,) * n)

    out2 = pl.pallas_call(
        graphormer_layer_kernel,
        out_shape=jax.ShapeDtypeStruct((B * S, E), src.dtype),
        grid=(B // bt,),
        in_specs=[
            pl.BlockSpec((rows, E), lambda i: (i, 0)),      # activations
            pl.BlockSpec((bt, S, S), lambda i: (i, 0, 0)),  # spatial bias
            pl.BlockSpec((bt, S, S), lambda i: (i, 0, 0)),  # directional bias
            const_spec(w_qk),                               # per-head Q/K slab
            const_spec(w_vo2),                              # fused V*Wout + linear2
            const_spec(misc),                               # linear1 + biases/LN
        ],
        out_specs=pl.BlockSpec((rows, E), lambda i: (i, 0)),
        compiler_params=pltpu.CompilerParams(dimension_semantics=("parallel",)),
    )(src2, spatial_bias, directional_bias, w_qk, w_vo2, misc)
    return out2.reshape(B, S, E)


# ---------------- pure-JAX reference (for correctness check) ----------------
def reference_layer(src, sb, db, params):
    (n1g, n1b, wq, bq, wk, bk, wv, bv, wo, bo, n2g, n2b, w1, b1, w2, b2) = params
    B, S, E = src.shape
    xn = _layer_norm(src, n1g, n1b)
    q = (xn @ wq + bq).reshape(B, S, NHEAD, HEAD_DIM).transpose(0, 2, 1, 3)
    k = (xn @ wk + bk).reshape(B, S, NHEAD, HEAD_DIM).transpose(0, 2, 1, 3)
    v = (xn @ wv + bv).reshape(B, S, NHEAD, HEAD_DIM).transpose(0, 2, 1, 3)
    scores = jnp.einsum('bhqd,bhkd->bhqk', q, k) * (HEAD_DIM ** -0.5)
    scores = scores + sb[:, None, :, :] + db[:, None, :, :]
    probs = jax.nn.softmax(scores, axis=-1)
    o = jnp.einsum('bhqk,bhkd->bhqd', probs, v).transpose(0, 2, 1, 3).reshape(B, S, E)
    attn = o @ wo + bo
    x1 = src + attn
    xn2 = _layer_norm(x1, n2g, n2b)
    ffn = _gelu(xn2 @ w1 + b1) @ w2 + b2
    return x1 + ffn


def init_params(key):
    ks = jax.random.split(key, 8)

    def w(k, shape):
        return jax.random.normal(k, shape, jnp.float32) * 0.02

    n1g = jnp.ones((D_MODEL,), jnp.float32)
    n1b = jnp.zeros((D_MODEL,), jnp.float32)
    wq = w(ks[0], (D_MODEL, D_MODEL)); bq = jnp.zeros((D_MODEL,), jnp.float32)
    wk = w(ks[1], (D_MODEL, D_MODEL)); bk = jnp.zeros((D_MODEL,), jnp.float32)
    wv = w(ks[2], (D_MODEL, D_MODEL)); bv = jnp.zeros((D_MODEL,), jnp.float32)
    wo = w(ks[3], (D_MODEL, D_MODEL)); bo = jnp.zeros((D_MODEL,), jnp.float32)
    n2g = jnp.ones((D_MODEL,), jnp.float32)
    n2b = jnp.zeros((D_MODEL,), jnp.float32)
    w1 = w(ks[4], (D_MODEL, DIM_FF)); b1 = w(ks[5], (DIM_FF,)) * 0.1
    w2 = w(ks[6], (DIM_FF, D_MODEL)); b2 = w(ks[7], (D_MODEL,)) * 0.1
    return (n1g, n1b, wq, bq, wk, bk, wv, bv, wo, bo, n2g, n2b, w1, b1, w2, b2)


if __name__ == "__main__":
    B, S = 4, 8          # batch=4 -> 2 batch elements fused per step, 2 grid steps
    key = jax.random.PRNGKey(0)
    k_src, k_sb, k_db, k_par = jax.random.split(key, 4)

    src = jax.random.normal(k_src, (B, S, D_MODEL), jnp.float32)
    spatial_bias = jax.random.normal(k_sb, (B, S, S), jnp.float32) * 0.1
    directional_bias = jax.random.normal(k_db, (B, S, S), jnp.float32) * 0.1
    params = init_params(k_par)

    out = graphormer_transformer_layer(src, spatial_bias, directional_bias, params)
    out = jax.block_until_ready(out)

    ref = reference_layer(src, spatial_bias, directional_bias, params)
    err = float(jnp.max(jnp.abs(out - ref)))
    assert err < 5e-4, f"max abs error {err}"
    print("KERNEL_OK")
</pallas_src>

<mosaic_0001>
module attributes {stable_mosaic.version = 11 : i64} {
  func.func @graphormer_layer_kernel(%arg0: i32, %arg1: memref<16x32xf32, #tpu.memory_space<vmem>>, %arg2: memref<2x8x8xf32, #tpu.memory_space<vmem>>, %arg3: memref<2x8x8xf32, #tpu.memory_space<vmem>>, %arg4: memref<320x8xf32, #tpu.memory_space<vmem>>, %arg5: memref<224x32xf32, #tpu.memory_space<vmem>>, %arg6: memref<40x64xf32, #tpu.memory_space<vmem>>, %arg7: memref<16x32xf32, #tpu.memory_space<vmem>>) attributes {dimension_semantics = [#tpu.dimension_semantics<parallel>], iteration_bounds = array<i64: 2>, scalar_prefetch = 0 : i64, scratch_operands = 0 : i64, tpu.core_type = #tpu.core_type<tc>, window_params = [{transform_indices = @transform_0, window_bounds = array<i64: 16, 32>}, {transform_indices = @transform_1, window_bounds = array<i64: 2, 8, 8>}, {transform_indices = @transform_2, window_bounds = array<i64: 2, 8, 8>}, {pipeline_mode = #tpu.pipeline_mode<synchronous>, transform_indices = @transform_3, window_bounds = array<i64: 320, 8>}, {pipeline_mode = #tpu.pipeline_mode<synchronous>, transform_indices = @transform_4, window_bounds = array<i64: 224, 32>}, {pipeline_mode = #tpu.pipeline_mode<synchronous>, transform_indices = @transform_5, window_bounds = array<i64: 40, 64>}, {transform_indices = @transform_6, window_bounds = array<i64: 16, 32>}]} {
    %c0 = arith.constant 0 : index
    %c0_0 = arith.constant 0 : index
    %0 = vector.load %arg1[%c0, %c0_0] : memref<16x32xf32, #tpu.memory_space<vmem>>, vector<16x32xf32>
    %c32 = arith.constant 32 : index
    %c0_1 = arith.constant 0 : index
    %1 = vector.load %arg6[%c32, %c0_1] : memref<40x64xf32, #tpu.memory_space<vmem>>, vector<8x64xf32>
    %2 = vector.extract_strided_slice %1 {offsets = [0, 0], sizes = [1, 32], strides = [1, 1]} : vector<8x64xf32> to vector<1x32xf32>
    %3 = vector.extract_strided_slice %1 {offsets = [1, 0], sizes = [1, 32], strides = [1, 1]} : vector<8x64xf32> to vector<1x32xf32>
    %cst = arith.constant dense<0.000000e+00> : vector<16xf32>
    %4 = vector.multi_reduction <add>, %0, %cst [1] : vector<16x32xf32> to vector<16xf32>
    %5 = vector.shape_cast %4 : vector<16xf32> to vector<16x1xf32>
    %cst_2 = arith.constant 3.200000e+01 : f32
    %6 = vector.broadcast %cst_2 : f32 to vector<16x1xf32>
    %7 = arith.divf %5, %6 : vector<16x1xf32>
    %8 = vector.broadcast %7 : vector<16x1xf32> to vector<16x32xf32>
    %9 = arith.subf %0, %8 : vector<16x32xf32>
    %10 = arith.mulf %9, %9 : vector<16x32xf32>
    %cst_3 = arith.constant dense<0.000000e+00> : vector<16xf32>
    %11 = vector.multi_reduction <add>, %10, %cst_3 [1] : vector<16x32xf32> to vector<16xf32>
    %12 = vector.shape_cast %11 : vector<16xf32> to vector<16x1xf32>
    %cst_4 = arith.constant 3.200000e+01 : f32
    %13 = vector.broadcast %cst_4 : f32 to vector<16x1xf32>
    %14 = arith.divf %12, %13 : vector<16x1xf32>
    %15 = vector.broadcast %7 : vector<16x1xf32> to vector<16x32xf32>
    %16 = arith.subf %0, %15 : vector<16x32xf32>
    %cst_5 = arith.constant 9.99999974E-6 : f32
    %17 = vector.broadcast %cst_5 : f32 to vector<16x1xf32>
    %18 = arith.addf %14, %17 : vector<16x1xf32>
    %19 = math.rsqrt %18 : vector<16x1xf32>
    %20 = vector.broadcast %19 : vector<16x1xf32> to vector<16x32xf32>
    %21 = arith.mulf %16, %20 : vector<16x32xf32>
    %22 = vector.broadcast %2 : vector<1x32xf32> to vector<16x32xf32>
    %23 = arith.mulf %21, %22 : vector<16x32xf32>
    %24 = vector.broadcast %3 : vector<1x32xf32> to vector<16x32xf32>
    %25 = arith.addf %23, %24 : vector<16x32xf32>
    %cst_6 = arith.constant 1.000000e+00 : f32
    %26 = vector.broadcast %cst_6 : f32 to vector<16x8xf32>
    %27 = tpu.concatenate %25, %26 in 1 : vector<16x32xf32>, vector<16x8xf32> -> vector<16x40xf32>
    %c0_7 = arith.constant 0 : index
    %c0_8 = arith.constant 0 : index
    %28 = vector.load %arg4[%c0_7, %c0_8] : memref<320x8xf32, #tpu.memory_space<vmem>>, vector<40x8xf32>
    %cst_9 = arith.constant dense<0.000000e+00> : vector<16x8xf32>
    %29 = tpu.matmul %27, %28, %cst_9 {dimension_numbers = #tpu.dot_dimension_numbers<[1], [0], [0], [1], [0, 0, 1, 1], [], []>} : vector<16x40xf32>, vector<40x8xf32>, vector<16x8xf32> -> vector<16x8xf32>
    %c40 = arith.constant 40 : index
    %c0_10 = arith.constant 0 : index
    %30 = vector.load %arg4[%c40, %c0_10] : memref<320x8xf32, #tpu.memory_space<vmem>>, vector<40x8xf32>
    %cst_11 = arith.constant dense<0.000000e+00> : vector<16x8xf32>
    %31 = tpu.matmul %27, %30, %cst_11 {dimension_numbers = #tpu.dot_dimension_numbers<[1], [0], [0], [1], [0, 0, 1, 1], [], []>} : vector<16x40xf32>, vector<40x8xf32>, vector<16x8xf32> -> vector<16x8xf32>
    %c80 = arith.constant 80 : index
    %c0_12 = arith.constant 0 : index
    %32 = vector.load %arg4[%c80, %c0_12] : memref<320x8xf32, #tpu.memory_space<vmem>>, vector<40x8xf32>
    %cst_13 = arith.constant dense<0.000000e+00> : vector<16x8xf32>
    %33 = tpu.matmul %27, %32, %cst_13 {dimension_numbers = #tpu.dot_dimension_numbers<[1], [0], [0], [1], [0, 0, 1, 1], [], []>} : vector<16x40xf32>, vector<40x8xf32>, vector<16x8xf32> -> vector<16x8xf32>
    %c120 = arith.constant 120 : index
    %c0_14 = arith.constant 0 : index
    %34 = vector.load %arg4[%c120, %c0_14] : memref<320x8xf32, #tpu.memory_space<vmem>>, vector<40x8xf32>
    %cst_15 = arith.constant dense<0.000000e+00> : vector<16x8xf32>
    %35 = tpu.matmul %27, %34, %cst_15 {dimension_numbers = #tpu.dot_dimension_numbers<[1], [0], [0], [1], [0, 0, 1, 1], [], []>} : vector<16x40xf32>, vector<40x8xf32>, vector<16x8xf32> -> vector<16x8xf32>
    %c160 = arith.constant 160 : index
    %c0_16 = arith.constant 0 : index
    %36 = vector.load %arg4[%c160, %c0_16] : memref<320x8xf32, #tpu.memory_space<vmem>>, vector<40x8xf32>
    %cst_17 = arith.constant dense<0.000000e+00> : vector<16x8xf32>
    %37 = tpu.matmul %27, %36, %cst_17 {dimension_numbers = #tpu.dot_dimension_numbers<[1], [0], [0], [1], [0, 0, 1, 1], [], []>} : vector<16x40xf32>, vector<40x8xf32>, vector<16x8xf32> -> vector<16x8xf32>
    %c200 = arith.constant 200 : index
    %c0_18 = arith.constant 0 : index
    %38 = vector.load %arg4[%c200, %c0_18] : memref<320x8xf32, #tpu.memory_space<vmem>>, vector<40x8xf32>
    %cst_19 = arith.constant dense<0.000000e+00> : vector<16x8xf32>
    %39 = tpu.matmul %27, %38, %cst_19 {dimension_numbers = #tpu.dot_dimension_numbers<[1], [0], [0], [1], [0, 0, 1, 1], [], []>} : vector<16x40xf32>, vector<40x8xf32>, vector<16x8xf32> -> vector<16x8xf32>
    %c240 = arith.constant 240 : index
    %c0_20 = arith.constant 0 : index
    %40 = vector.load %arg4[%c240, %c0_20] : memref<320x8xf32, #tpu.memory_space<vmem>>, vector<40x8xf32>
    %cst_21 = arith.constant dense<0.000000e+00> : vector<16x8xf32>
    %41 = tpu.matmul %27, %40, %cst_21 {dimension_numbers = #tpu.dot_dimension_numbers<[1], [0], [0], [1], [0, 0, 1, 1], [], []>} : vector<16x40xf32>, vector<40x8xf32>, vector<16x8xf32> -> vector<16x8xf32>
    %c280 = arith.constant 280 : index
    %c0_22 = arith.constant 0 : index
    %42 = vector.load %arg4[%c280, %c0_22] : memref<320x8xf32, #tpu.memory_space<vmem>>, vector<40x8xf32>
    %cst_23 = arith.constant dense<0.000000e+00> : vector<16x8xf32>
    %43 = tpu.matmul %27, %42, %cst_23 {dimension_numbers = #tpu.dot_dimension_numbers<[1], [0], [0], [1], [0, 0, 1, 1], [], []>} : vector<16x40xf32>, vector<40x8xf32>, vector<16x8xf32> -> vector<16x8xf32>
    %c0_24 = arith.constant 0 : index
    %c0_25 = arith.constant 0 : index
    %44 = vector.load %arg5[%c0_24, %c0_25] : memref<224x32xf32, #tpu.memory_space<vmem>>, vector<40x32xf32>
    %cst_26 = arith.constant dense<0.000000e+00> : vector<16x32xf32>
    %45 = tpu.matmul %27, %44, %cst_26 {dimension_numbers = #tpu.dot_dimension_numbers<[1], [0], [0], [1], [0, 0, 1, 1], [], []>} : vector<16x40xf32>, vector<40x32xf32>, vector<16x32xf32> -> vector<16x32xf32>
    %c40_27 = arith.constant 40 : index
    %c0_28 = arith.constant 0 : index
    %46 = vector.load %arg5[%c40_27, %c0_28] : memref<224x32xf32, #tpu.memory_space<vmem>>, vector<40x32xf32>
    %cst_29 = arith.constant dense<0.000000e+00> : vector<16x32xf32>
    %47 = tpu.matmul %27, %46, %cst_29 {dimension_numbers = #tpu.dot_dimension_numbers<[1], [0], [0], [1], [0, 0, 1, 1], [], []>} : vector<16x40xf32>, vector<40x32xf32>, vector<16x32xf32> -> vector<16x32xf32>
    %c80_30 = arith.constant 80 : index
    %c0_31 = arith.constant 0 : index
    %48 = vector.load %arg5[%c80_30, %c0_31] : memref<224x32xf32, #tpu.memory_space<vmem>>, vector<40x32xf32>
    %cst_32 = arith.constant dense<0.000000e+00> : vector<16x32xf32>
    %49 = tpu.matmul %27, %48, %cst_32 {dimension_numbers = #tpu.dot_dimension_numbers<[1], [0], [0], [1], [0, 0, 1, 1], [], []>} : vector<16x40xf32>, vector<40x32xf32>, vector<16x32xf32> -> vector<16x32xf32>
    %c120_33 = arith.constant 120 : index
    %c0_34 = arith.constant 0 : index
    %50 = vector.load %arg5[%c120_33, %c0_34] : memref<224x32xf32, #tpu.memory_space<vmem>>, vector<40x32xf32>
    %cst_35 = arith.constant dense<0.000000e+00> : vector<16x32xf32>
    %51 = tpu.matmul %27, %50, %cst_35 {dimension_numbers = #tpu.dot_dimension_numbers<[1], [0], [0], [1], [0, 0, 1, 1], [], []>} : vector<16x40xf32>, vector<40x32xf32>, vector<16x32xf32> -> vector<16x32xf32>
    %c0_36 = arith.constant 0 : index
    %c0_37 = arith.constant 0 : index
    %c0_38 = arith.constant 0 : index
    %52 = vector.load %arg2[%c0_36, %c0_37, %c0_38] : memref<2x8x8xf32, #tpu.memory_space<vmem>>, vector<2x8x8xf32>
    %c0_39 = arith.constant 0 : index
    %c0_40 = arith.constant 0 : index
    %c0_41 = arith.constant 0 : index
    %53 = vector.load %arg3[%c0_39, %c0_40, %c0_41] : memref<2x8x8xf32, #tpu.memory_space<vmem>>, vector<2x8x8xf32>
    %54 = arith.addf %52, %53 : vector<2x8x8xf32>
    %55 = vector.extract_strided_slice %54 {offsets = [0, 0, 0], sizes = [1, 8, 8], strides = [1, 1, 1]} : vector<2x8x8xf32> to vector<1x8x8xf32>
    %56 = vector.shape_cast %55 : vector<1x8x8xf32> to vector<8x8xf32>
    %57 = vector.extract_strided_slice %29 {offsets = [0, 0], sizes = [8, 8], strides = [1, 1]} : vector<16x8xf32> to vector<8x8xf32>
    %58 = vector.extract_strided_slice %37 {offsets = [0, 0], sizes = [8, 8], strides = [1, 1]} : vector<16x8xf32> to vector<8x8xf32>
    %cst_42 = arith.constant dense<0.000000e+00> : vector<8x8xf32>
    %59 = tpu.matmul %57, %58, %cst_42 {dimension_numbers = #tpu.dot_dimension_numbers<[1], [1], [0], [0], [0, 0, 1, 0], [], []>} : vector<8x8xf32>, vector<8x8xf32>, vector<8x8xf32> -> vector<8x8xf32>
    %60 = arith.addf %59, %56 : vector<8x8xf32>
    %61 = vector.extract_strided_slice %31 {offsets = [0, 0], sizes = [8, 8], strides = [1, 1]} : vector<16x8xf32> to vector<8x8xf32>
    %62 = vector.extract_strided_slice %39 {offsets = [0, 0], sizes = [8, 8], strides = [1, 1]} : vector<16x8xf32> to vector<8x8xf32>
    %cst_43 = arith.constant dense<0.000000e+00> : vector<8x8xf32>
    %63 = tpu.matmul %61, %62, %cst_43 {dimension_numbers = #tpu.dot_dimension_numbers<[1], [1], [0], [0], [0, 0, 1, 0], [], []>} : vector<8x8xf32>, vector<8x8xf32>, vector<8x8xf32> -> vector<8x8xf32>
    %64 = arith.addf %63, %56 : vector<8x8xf32>
    %65 = vector.extract_strided_slice %33 {offsets = [0, 0], sizes = [8, 8], strides = [1, 1]} : vector<16x8xf32> to vector<8x8xf32>
    %66 = vector.extract_strided_slice %41 {offsets = [0, 0], sizes = [8, 8], strides = [1, 1]} : vector<16x8xf32> to vector<8x8xf32>
    %cst_44 = arith.constant dense<0.000000e+00> : vector<8x8xf32>
    %67 = tpu.matmul %65, %66, %cst_44 {dimension_numbers = #tpu.dot_dimension_numbers<[1], [1], [0], [0], [0, 0, 1, 0], [], []>} : vector<8x8xf32>, vector<8x8xf32>, vector<8x8xf32> -> vector<8x8xf32>
    %68 = arith.addf %67, %56 : vector<8x8xf32>
    %69 = vector.extract_strided_slice %35 {offsets = [0, 0], sizes = [8, 8], strides = [1, 1]} : vector<16x8xf32> to vector<8x8xf32>
    %70 = vector.extract_strided_slice %43 {offsets = [0, 0], sizes = [8, 8], strides = [1, 1]} : vector<16x8xf32> to vector<8x8xf32>
    %cst_45 = arith.constant dense<0.000000e+00> : vector<8x8xf32>
    %71 = tpu.matmul %69, %70, %cst_45 {dimension_numbers = #tpu.dot_dimension_numbers<[1], [1], [0], [0], [0, 0, 1, 0], [], []>} : vector<8x8xf32>, vector<8x8xf32>, vector<8x8xf32> -> vector<8x8xf32>
    %72 = arith.addf %71, %56 : vector<8x8xf32>
    %73 = vector.extract_strided_slice %54 {offsets = [1, 0, 0], sizes = [1, 8, 8], strides = [1, 1, 1]} : vector<2x8x8xf32> to vector<1x8x8xf32>
    %74 = vector.shape_cast %73 : vector<1x8x8xf32> to vector<8x8xf32>
    %75 = vector.extract_strided_slice %29 {offsets = [8, 0], sizes = [8, 8], strides = [1, 1]} : vector<16x8xf32> to vector<8x8xf32>
    %76 = vector.extract_strided_slice %37 {offsets = [8, 0], sizes = [8, 8], strides = [1, 1]} : vector<16x8xf32> to vector<8x8xf32>
    %cst_46 = arith.constant dense<0.000000e+00> : vector<8x8xf32>
    %77 = tpu.matmul %75, %76, %cst_46 {dimension_numbers = #tpu.dot_dimension_numbers<[1], [1], [0], [0], [0, 0, 1, 0], [], []>} : vector<8x8xf32>, vector<8x8xf32>, vector<8x8xf32> -> vector<8x8xf32>
    %78 = arith.addf %77, %74 : vector<8x8xf32>
    %79 = vector.extract_strided_slice %31 {offsets = [8, 0], sizes = [8, 8], strides = [1, 1]} : vector<16x8xf32> to vector<8x8xf32>
    %80 = vector.extract_strided_slice %39 {offsets = [8, 0], sizes = [8, 8], strides = [1, 1]} : vector<16x8xf32> to vector<8x8xf32>
    %cst_47 = arith.constant dense<0.000000e+00> : vector<8x8xf32>
    %81 = tpu.matmul %79, %80, %cst_47 {dimension_numbers = #tpu.dot_dimension_numbers<[1], [1], [0], [0], [0, 0, 1, 0], [], []>} : vector<8x8xf32>, vector<8x8xf32>, vector<8x8xf32> -> vector<8x8xf32>
    %82 = arith.addf %81, %74 : vector<8x8xf32>
    %83 = vector.extract_strided_slice %33 {offsets = [8, 0], sizes = [8, 8], strides = [1, 1]} : vector<16x8xf32> to vector<8x8xf32>
    %84 = vector.extract_strided_slice %41 {offsets = [8, 0], sizes = [8, 8], strides = [1, 1]} : vector<16x8xf32> to vector<8x8xf32>
    %cst_48 = arith.constant dense<0.000000e+00> : vector<8x8xf32>
    %85 = tpu.matmul %83, %84, %cst_48 {dimension_numbers = #tpu.dot_dimension_numbers<[1], [1], [0], [0], [0, 0, 1, 0], [], []>} : vector<8x8xf32>, vector<8x8xf32>, vector<8x8xf32> -> vector<8x8xf32>
    %86 = arith.addf %85, %74 : vector<8x8xf32>
    %87 = vector.extract_strided_slice %35 {offsets = [8, 0], sizes = [8, 8], strides = [1, 1]} : vector<16x8xf32> to vector<8x8xf32>
    %88 = vector.extract_strided_slice %43 {offsets = [8, 0], sizes = [8, 8], strides = [1, 1]} : vector<16x8xf32> to vector<8x8xf32>
    %cst_49 = arith.constant dense<0.000000e+00> : vector<8x8xf32>
    %89 = tpu.matmul %87, %88, %cst_49 {dimension_numbers = #tpu.dot_dimension_numbers<[1], [1], [0], [0], [0, 0, 1, 0], [], []>} : vector<8x8xf32>, vector<8x8xf32>, vector<8x8xf32> -> vector<8x8xf32>
    %90 = arith.addf %89, %74 : vector<8x8xf32>
    %91 = tpu.concatenate %60, %64, %68, %72, %78, %82, %86, %90 in 0 : vector<8x8xf32>, vector<8x8xf32>, vector<8x8xf32>, vector<8x8xf32>, vector<8x8xf32>, vector<8x8xf32>, vector<8x8xf32>, vector<8x8xf32> -> vector<64x8xf32>
    %cst_50 = arith.constant dense<0xFF800000> : vector<64xf32>
    %92 = vector.multi_reduction <maximumf>, %91, %cst_50 [1] : vector<64x8xf32> to vector<64xf32>
    %93 = vector.shape_cast %92 : vector<64xf32> to vector<64x1xf32>
    %94 = vector.broadcast %93 : vector<64x1xf32> to vector<64x8xf32>
    %95 = arith.subf %91, %94 : vector<64x8xf32>
    %96 = math.exp %95 : vector<64x8xf32>
    %cst_51 = arith.constant dense<0.000000e+00> : vector<64xf32>
    %97 = vector.multi_reduction <add>, %96, %cst_51 [1] : vector<64x8xf32> to vector<64xf32>
    %98 = vector.shape_cast %97 : vector<64xf32> to vector<64x1xf32>
    %99 = tpu.reciprocal %98 {approx = true} : vector<64x1xf32> -> vector<64x1xf32>
    %100 = vector.broadcast %99 : vector<64x1xf32> to vector<64x8xf32>
    %101 = arith.mulf %96, %100 : vector<64x8xf32>
    %102 = vector.extract_strided_slice %101 {offsets = [0, 0], sizes = [8, 8], strides = [1, 1]} : vector<64x8xf32> to vector<8x8xf32>
    %103 = vector.extract_strided_slice %45 {offsets = [0, 0], sizes = [8, 32], strides = [1, 1]} : vector<16x32xf32> to vector<8x32xf32>
    %cst_52 = arith.constant dense<0.000000e+00> : vector<8x32xf32>
    %104 = tpu.matmul %102, %103, %cst_52 {dimension_numbers = #tpu.dot_dimension_numbers<[1], [0], [0], [1], [0, 0, 1, 1], [], []>} : vector<8x8xf32>, vector<8x32xf32>, vector<8x32xf32> -> vector<8x32xf32>
    %105 = vector.extract_strided_slice %101 {offsets = [8, 0], sizes = [8, 8], strides = [1, 1]} : vector<64x8xf32> to vector<8x8xf32>
    %106 = vector.extract_strided_slice %47 {offsets = [0, 0], sizes = [8, 32], strides = [1, 1]} : vector<16x32xf32> to vector<8x32xf32>
    %cst_53 = arith.constant dense<0.000000e+00> : vector<8x32xf32>
    %107 = tpu.matmul %105, %106, %cst_53 {dimension_numbers = #tpu.dot_dimension_numbers<[1], [0], [0], [1], [0, 0, 1, 1], [], []>} : vector<8x8xf32>, vector<8x32xf32>, vector<8x32xf32> -> vector<8x32xf32>
    %108 = arith.addf %104, %107 : vector<8x32xf32>
    %109 = vector.extract_strided_slice %101 {offsets = [16, 0], sizes = [8, 8], strides = [1, 1]} : vector<64x8xf32> to vector<8x8xf32>
    %110 = vector.extract_strided_slice %49 {offsets = [0, 0], sizes = [8, 32], strides = [1, 1]} : vector<16x32xf32> to vector<8x32xf32>
    %cst_54 = arith.constant dense<0.000000e+00> : vector<8x32xf32>
    %111 = tpu.matmul %109, %110, %cst_54 {dimension_numbers = #tpu.dot_dimension_numbers<[1], [0], [0], [1], [0, 0, 1, 1], [], []>} : vector<8x8xf32>, vector<8x32xf32>, vector<8x32xf32> -> vector<8x32xf32>
    %112 = arith.addf %108, %111 : vector<8x32xf32>
    %113 = vector.extract_strided_slice %101 {offsets = [24, 0], sizes = [8, 8], strides = [1, 1]} : vector<64x8xf32> to vector<8x8xf32>
    %114 = vector.extract_strided_slice %51 {offsets = [0, 0], sizes = [8, 32], strides = [1, 1]} : vector<16x32xf32> to vector<8x32xf32>
    %cst_55 = arith.constant dense<0.000000e+00> : vector<8x32xf32>
    %115 = tpu.matmul %113, %114, %cst_55 {dimension_numbers = #tpu.dot_dimension_numbers<[1], [0], [0], [1], [0, 0, 1, 1], [], []>} : vector<8x8xf32>, vector<8x32xf32>, vector<8x32xf32> -> vector<8x32xf32>
    %116 = arith.addf %112, %115 : vector<8x32xf32>
    %117 = vector.extract_strided_slice %101 {offsets = [32, 0], sizes = [8, 8], strides = [1, 1]} : vector<64x8xf32> to vector<8x8xf32>
    %118 = vector.extract_strided_slice %45 {offsets = [8, 0], sizes = [8, 32], strides = [1, 1]} : vector<16x32xf32> to vector<8x32xf32>
    %cst_56 = arith.constant dense<0.000000e+00> : vector<8x32xf32>
    %119 = tpu.matmul %117, %118, %cst_56 {dimension_numbers = #tpu.dot_dimension_numbers<[1], [0], [0], [1], [0, 0, 1, 1], [], []>} : vector<8x8xf32>, vector<8x32xf32>, vector<8x32xf32> -> vector<8x32xf32>
    %120 = vector.extract_strided_slice %101 {offsets = [40, 0], sizes = [8, 8], strides = [1, 1]} : vector<64x8xf32> to vector<8x8xf32>
    %121 = vector.extract_strided_slice %47 {offsets = [8, 0], sizes = [8, 32], strides = [1, 1]} : vector<16x32xf32> to vector<8x32xf32>
    %cst_57 = arith.constant dense<0.000000e+00> : vector<8x32xf32>
    %122 = tpu.matmul %120, %121, %cst_57 {dimension_numbers = #tpu.dot_dimension_numbers<[1], [0], [0], [1], [0, 0, 1, 1], [], []>} : vector<8x8xf32>, vector<8x32xf32>, vector<8x32xf32> -> vector<8x32xf32>
    %123 = arith.addf %119, %122 : vector<8x32xf32>
    %124 = vector.extract_strided_slice %101 {offsets = [48, 0], sizes = [8, 8], strides = [1, 1]} : vector<64x8xf32> to vector<8x8xf32>
    %125 = vector.extract_strided_slice %49 {offsets = [8, 0], sizes = [8, 32], strides = [1, 1]} : vector<16x32xf32> to vector<8x32xf32>
    %cst_58 = arith.constant dense<0.000000e+00> : vector<8x32xf32>
    %126 = tpu.matmul %124, %125, %cst_58 {dimension_numbers = #tpu.dot_dimension_numbers<[1], [0], [0], [1], [0, 0, 1, 1], [], []>} : vector<8x8xf32>, vector<8x32xf32>, vector<8x32xf32> -> vector<8x32xf32>
    %127 = arith.addf %123, %126 : vector<8x32xf32>
    %128 = vector.extract_strided_slice %101 {offsets = [56, 0], sizes = [8, 8], strides = [1, 1]} : vector<64x8xf32> to vector<8x8xf32>
    %129 = vector.extract_strided_slice %51 {offsets = [8, 0], sizes = [8, 32], strides = [1, 1]} : vector<16x32xf32> to vector<8x32xf32>
    %cst_59 = arith.constant dense<0.000000e+00> : vector<8x32xf32>
    %130 = tpu.matmul %128, %129, %cst_59 {dimension_numbers = #tpu.dot_dimension_numbers<[1], [0], [0], [1], [0, 0, 1, 1], [], []>} : vector<8x8xf32>, vector<8x32xf32>, vector<8x32xf32> -> vector<8x32xf32>
    %131 = arith.addf %127, %130 : vector<8x32xf32>
    %132 = tpu.concatenate %116, %131 in 0 : vector<8x32xf32>, vector<8x32xf32> -> vector<16x32xf32>
    %133 = vector.extract_strided_slice %1 {offsets = [2, 0], sizes = [1, 32], strides = [1, 1]} : vector<8x64xf32> to vector<1x32xf32>
    %134 = vector.broadcast %133 : vector<1x32xf32> to vector<16x32xf32>
    %135 = arith.addf %132, %134 : vector<16x32xf32>
    %136 = arith.addf %0, %135 : vector<16x32xf32>
    %137 = vector.extract_strided_slice %1 {offsets = [3, 0], sizes = [1, 32], strides = [1, 1]} : vector<8x64xf32> to vector<1x32xf32>
    %138 = vector.extract_strided_slice %1 {offsets = [4, 0], sizes = [1, 32], strides = [1, 1]} : vector<8x64xf32> to vector<1x32xf32>
    %cst_60 = arith.constant dense<0.000000e+00> : vector<16xf32>
    %139 = vector.multi_reduction <add>, %136, %cst_60 [1] : vector<16x32xf32> to vector<16xf32>
    %140 = vector.shape_cast %139 : vector<16xf32> to vector<16x1xf32>
    %cst_61 = arith.constant 3.200000e+01 : f32
    %141 = vector.broadcast %cst_61 : f32 to vector<16x1xf32>
    %142 = arith.divf %140, %141 : vector<16x1xf32>
    %143 = vector.broadcast %142 : vector<16x1xf32> to vector<16x32xf32>
    %144 = arith.subf %136, %143 : vector<16x32xf32>
    %145 = arith.mulf %144, %144 : vector<16x32xf32>
    %cst_62 = arith.constant dense<0.000000e+00> : vector<16xf32>
    %146 = vector.multi_reduction <add>, %145, %cst_62 [1] : vector<16x32xf32> to vector<16xf32>
    %147 = vector.shape_cast %146 : vector<16xf32> to vector<16x1xf32>
    %cst_63 = arith.constant 3.200000e+01 : f32
    %148 = vector.broadcast %cst_63 : f32 to vector<16x1xf32>
    %149 = arith.divf %147, %148 : vector<16x1xf32>
    %150 = vector.broadcast %142 : vector<16x1xf32> to vector<16x32xf32>
    %151 = arith.subf %136, %150 : vector<16x32xf32>
    %cst_64 = arith.constant 9.99999974E-6 : f32
    %152 = vector.broadcast %cst_64 : f32 to vector<16x1xf32>
    %153 = arith.addf %149, %152 : vector<16x1xf32>
    %154 = math.rsqrt %153 : vector<16x1xf32>
    %155 = vector.broadcast %154 : vector<16x1xf32> to vector<16x32xf32>
    %156 = arith.mulf %151, %155 : vector<16x32xf32>
    %157 = vector.broadcast %137 : vector<1x32xf32> to vector<16x32xf32>
    %158 = arith.mulf %156, %157 : vector<16x32xf32>
    %159 = vector.broadcast %138 : vector<1x32xf32> to vector<16x32xf32>
    %160 = arith.addf %158, %159 : vector<16x32xf32>
    %c0_65 = arith.constant 0 : index
    %c0_66 = arith.constant 0 : index
    %161 = vector.load %arg6[%c0_65, %c0_66] : memref<40x64xf32, #tpu.memory_space<vmem>>, vector<32x64xf32>
    %cst_67 = arith.constant dense<0.000000e+00> : vector<16x64xf32>
    %162 = tpu.matmul %160, %161, %cst_67 {dimension_numbers = #tpu.dot_dimension_numbers<[1], [0], [0], [1], [0, 0, 1, 1], [], []>} : vector<16x32xf32>, vector<32x64xf32>, vector<16x64xf32> -> vector<16x64xf32>
    %163 = vector.extract_strided_slice %1 {offsets = [5, 0], sizes = [1, 64], strides = [1, 1]} : vector<8x64xf32> to vector<1x64xf32>
    %164 = vector.broadcast %163 : vector<1x64xf32> to vector<16x64xf32>
    %165 = arith.addf %162, %164 : vector<16x64xf32>
    %cst_68 = arith.constant 5.000000e-01 : f32
    %166 = vector.broadcast %cst_68 : f32 to vector<16x64xf32>
    %167 = arith.mulf %166, %165 : vector<16x64xf32>
    %cst_69 = arith.constant 0.707106769 : f32
    %168 = vector.broadcast %cst_69 : f32 to vector<16x64xf32>
    %169 = arith.mulf %165, %168 : vector<16x64xf32>
    %170 = math.erf %169 : vector<16x64xf32>
    %cst_70 = arith.constant 1.000000e+00 : f32
    %171 = vector.broadcast %cst_70 : f32 to vector<16x64xf32>
    %172 = arith.addf %171, %170 : vector<16x64xf32>
    %173 = arith.mulf %167, %172 : vector<16x64xf32>
    %c160_71 = arith.constant 160 : index
    %c0_72 = arith.constant 0 : index
    %174 = vector.load %arg5[%c160_71, %c0_72] : memref<224x32xf32, #tpu.memory_space<vmem>>, vector<64x32xf32>
    %cst_73 = arith.constant dense<0.000000e+00> : vector<16x32xf32>
    %175 = tpu.matmul %173, %174, %cst_73 {dimension_numbers = #tpu.dot_dimension_numbers<[1], [0], [0], [1], [0, 0, 1, 1], [], []>} : vector<16x64xf32>, vector<64x32xf32>, vector<16x32xf32> -> vector<16x32xf32>
    %176 = vector.extract_strided_slice %1 {offsets = [6, 0], sizes = [1, 32], strides = [1, 1]} : vector<8x64xf32> to vector<1x32xf32>
    %177 = vector.broadcast %176 : vector<1x32xf32> to vector<16x32xf32>
    %178 = arith.addf %175, %177 : vector<16x32xf32>
    %179 = arith.addf %136, %178 : vector<16x32xf32>
    %c0_74 = arith.constant 0 : index
    %c0_75 = arith.constant 0 : index
    %180 = vector.load %arg7[%c0_74, %c0_75] : memref<16x32xf32, #tpu.memory_space<vmem>>, vector<16x32xf32>
    tpu.vector_store %arg7[%c0_74, %c0_75], %179 {strides = array<i32>} : memref<16x32xf32, #tpu.memory_space<vmem>>, vector<16x32xf32>,
    return
  }
  func.func @transform_0(%arg0: i32) -> (i32, i32) {
    %c0_i32 = arith.constant 0 : i32
    %c0_i32_0 = arith.constant 0 : i32
    return %arg0, %c0_i32 : i32, i32
  }
  func.func @transform_1(%arg0: i32) -> (i32, i32, i32) {
    %c0_i32 = arith.constant 0 : i32
    %c0_i32_0 = arith.constant 0 : i32
    %c0_i32_1 = arith.constant 0 : i32
    return %arg0, %c0_i32, %c0_i32_0 : i32, i32, i32
  }
  func.func @transform_2(%arg0: i32) -> (i32, i32, i32) {
    %c0_i32 = arith.constant 0 : i32
    %c0_i32_0 = arith.constant 0 : i32
    %c0_i32_1 = arith.constant 0 : i32
    return %arg0, %c0_i32, %c0_i32_0 : i32, i32, i32
  }
  func.func @transform_3(%arg0: i32) -> (i32, i32) {
    %c0_i32 = arith.constant 0 : i32
    %c0_i32_0 = arith.constant 0 : i32
    %c0_i32_1 = arith.constant 0 : i32
    return %c0_i32, %c0_i32_0 : i32, i32
  }
  func.func @transform_4(%arg0: i32) -> (i32, i32) {
    %c0_i32 = arith.constant 0 : i32
    %c0_i32_0 = arith.constant 0 : i32
    %c0_i32_1 = arith.constant 0 : i32
    return %c0_i32, %c0_i32_0 : i32, i32
  }
  func.func @transform_5(%arg0: i32) -> (i32, i32) {
    %c0_i32 = arith.constant 0 : i32
    %c0_i32_0 = arith.constant 0 : i32
    %c0_i32_1 = arith.constant 0 : i32
    return %c0_i32, %c0_i32_0 : i32, i32
  }
  func.func @transform_6(%arg0: i32) -> (i32, i32) {
    %c0_i32 = arith.constant 0 : i32
    %c0_i32_0 = arith.constant 0 : i32
    return %arg0, %c0_i32 : i32, i32
  }
}

</mosaic_0001>

<bundles_post_ra>
// kernel: tpu_custom_call.1
= control target key start
LH: loop header
LB: loop body
LE: loop exit
PB: predicated region body
PF: predicated region fallthrough
CT: control target
= control target key end

     0   :  { %11 = vsyncpa [#allocation3], 0  ;;  %s4263_s0 = inlined_call_operand.vmem [shape: f32[32,32], index: 0, kind: input, shape index: {}]   ;;  %s4264_s1 = inlined_call_operand.vmem [shape: f32[4,8,8], index: 1, kind: input, shape index: {}]   ;;  %s4265_s2 = inlined_call_operand.vmem [shape: f32[4,8,8], index: 2, kind: input, shape index: {}]   ;;  %s4266_s3 = inlined_call_operand.vmem [shape: f32[320,8], index: 3, kind: input, shape index: {}]   ;;  %s4267_s4 = inlined_call_operand.vmem [shape: f32[224,32], index: 4, kind: input, shape index: {}]   ;;  %s4268_s5 = inlined_call_operand.vmem [shape: f32[40,64], index: 5, kind: input, shape index: {}]   ;;  %s4269_s6 = inlined_call_operand.hbm [shape: f32[32,32], index: 6, kind: output, shape index: {}]  }
   0x1   :  { %13 = vsyncpa [#allocation3 + $0x1], 0  ;;  %s3721_s21 = smov 0   ;;  %s3723_s22 = smov 0  }
   0x2   :  { %s3725_s23 = smov 0   ;;  %s3727_s24 = smov 0  }
   0x3 LB: > { %s3742_s25 = sadd.s32 4294967295, %s3679_s24   ;;  %s2943_s26 = sadd.s32 4294967294, %s3679_s24   ;;  %s3679_s24 = sphi %s3727_s24, %s4275_s24   ;;  %s3675_s23 = sphi %s3725_s23, %s4274_s23   ;;  %s3671_s22 = sphi %s3723_s22, %s4273_s22   ;;  %s3667_s21 = sphi %s3721_s21, %s4272_s21  }
   0x4   : > { %s3746_s27 = sadd.s32 1, %s3679_s24   ;;  %s167_s28 = sadd.s32 1, %s3675_s23 }
   0x5   : > { %s164_s29 = ssub.s32 %s3679_s24, %s3746_s27  ;;  %p177_p0 = scmp.ne.s32.totalorder %s3675_s23, %s3671_s22 }
   0x6   : > { %p165_p1 = scmp.eq.s32.totalorder %s164_s29, 0  ;;  %p178_p2 = scmp.eq.s32.totalorder %s3742_s25, 1 }
   0x7   : > { %p183_p3 = scmp.ne.s32.totalorder %s3671_s22, %s3667_s21  ;;  %p184_p4 = scmp.eq.s32.totalorder %s2943_s26, 1 }
   0x8   : > { %s3757_s30 = scalar_select %p165_p1, %s3675_s23, %s167_s28  }
   0x9   : > { %p3759_p5 = por %p178_p2, %p177_p0  ;;  %p3763_p6 = por %p184_p4, %p183_p3 }
   0xa   : > { %p2946_p7 = scmp.ge.s32.totalorder %s3679_s24, 1  ;;  %p238_p8 = scmp.lt.s32.totalorder %s3679_s24, 3 }
   0xc   : > { %p239_p9 = pnand %p2946_p7, %p238_p8 }
   0xd   : > { %s2948_s9 = sshll.u32 (!%p239_p9), %s3742_s25, 1  ;;  %vm300_vm0 = vcmask (!%p239_p9), 261120   ;;  %v342_v14 = vld [vmem:[%s4266_s3] sm:$0xff] (!%p239_p9)  ;;  %v343_v15 = vld [vmem:[%s4266_s3 + $0x8] sm:$0xff] (!%p239_p9)  ;;  %v430_v18 = vld [vmem:[%s4266_s3 + $0x30] sm:$0xff] (!%p239_p9)  ;;  %v328_v36 = vlaneseq (!%p239_p9)  ;;  %vm347_vm1 = vcmask (!%p239_p9), 326656  }
   0xe   : > { %242 = sbr.rel (%p239_p9) target bundleno = 2128 (0x850), region = 44  ;;  %p279_p10 = scmp.lt.s32.totalorder (!%p239_p9), %s2948_s9, 3  ;;  %v429_v16 = vld [vmem:[%s4266_s3 + $0x28] sm:$0xff] (!%p239_p9)  ;;  %v3410_v17 = vpack.c.bf16 (!%p239_p9), %v343_v15, %v342_v14  ;;  %v344_v20 = vld [vmem:[%s4266_s3 + $0x10] sm:$0xff] (!%p239_p9)  ;;  %v345_v21 = vld [vmem:[%s4266_s3 + $0x18] sm:$0xff] (!%p239_p9)  ;;  %vm3682_vm2 = vmmov (!%p239_p9), 0  }
   0xf   : > { %v3418_v19 = vpack.c.bf16 (!%p239_p9), %v430_v18, %v429_v16  ;;  %v431_v22 = vld [vmem:[%s4266_s3 + $0x38] sm:$0xff] (!%p239_p9)  ;;  %v3414_v23 = vpack.c.bf16 (!%p239_p9), %v345_v21, %v344_v20  ;;  %v432_v24 = vld [vmem:[%s4266_s3 + $0x40] sm:$0xff] (!%p239_p9)  ;;  %v433_v27 = vld [vmem:[%s4266_s3 + $0x48] sm:$0xff] (!%p239_p9)  ;;  %v3830_v40 = vshrl.u32 (!%p239_p9), %v328_v36, 7  ;;  %vm1315_vm3 = vcmask (!%p239_p9), 64512   ;;  %s3011_s14 = sshll.u32 (!%p239_p9), %s3742_s25, 8 }
  0x10   : > { %3411 = vmatprep.subr.bf16.mxu0 (!%p239_p9), %v3410_v17  ;;  %v3422_v25 = vpack.c.bf16 (!%p239_p9), %v432_v24, %v431_v22  ;;  %v346_v26 = vld [vmem:[%s4266_s3 + $0x20] sm:$0xff] (!%p239_p9)  ;;  %v509_v28 = vld [vmem:[%s4266_s3 + $0x50] sm:$0xff] (!%p239_p9)  ;;  %v510_v29 = vld [vmem:[%s4266_s3 + $0x58] sm:$0xff] (!%p239_p9)  ;;  %vm2757_vm4 = vcmask (!%p239_p9), 523264   ;;  %s4215_s16 = scalar_lea.hbm (!%p239_p9), %s4269_s6, %s3011_s14  ;;  %s3683_s18 = smov (!%p239_p9), [#allocation2]  }
  0x11   : > { %3419 = vmatprep.subr.bf16.mxu1 (!%p239_p9), %v3418_v19  ;;  %3413 = vmatpush3.bf16.msra.mxu0 (!%p239_p9), %v3410_v17  ;;  %v589_v30 = vld [vmem:[%s4266_s3 + $0x78] sm:$0xff] (!%p239_p9)  ;;  %v590_v31 = vld [vmem:[%s4266_s3 + $0x80] sm:$0xff] (!%p239_p9)  ;;  %v3426_v32 = vpack.c.bf16 (!%p239_p9), %v510_v29, %v509_v28  ;;  %v330_v42 = vsub.s32 (!%p239_p9), 0, %v3830_v40  ;;  %v336_v44 = vsub.s32 (!%p239_p9), 1, %v3830_v40  ;;  %v512_v56 = vld [vmem:[%s4266_s3 + $0x68] sm:$0xff] (!%p239_p9)  ;;  %s3621_s19 = sshll.u32 (!%p239_p9), %s3683_s18, 4  ;;  %s3622_s19 = int_to_ptr.vmem [resolvable:$false] %s3621_s19 }
  0x12   : > { %3421 = vmatpush3.bf16.msra.mxu1 (!%p239_p9), %v3418_v19  ;;  %3415 = vmatprep.subr.bf16.mxu0 (!%p239_p9), %v3414_v23  ;;  %v3434_v33 = vpack.c.bf16 (!%p239_p9), %v590_v31, %v589_v30  ;;  %v3836_v43 = vld [vmem:[%s4268_s5 + $0x20] sm:$0xff] (!%p239_p9)  ;;  %v591_v57 = vld [vmem:[%s4266_s3 + $0x88] sm:$0xff] (!%p239_p9)  ;;  %v592_v58 = vld [vmem:[%s4266_s3 + $0x90] sm:$0xff] (!%p239_p9)  ;;  %s3623_s20 = scalar_lea.vmem (!%p239_p9), %s3622_s19, 512 }
  0x13   : > { %3423 = vmatprep.subr.bf16.mxu1 (!%p239_p9), %v3422_v25  ;;  %v331_v45 = vrot.slane (!%p239_p9), %v3836_v43, %v330_v42  ;;  %v337_v47 = vrot.slane (!%p239_p9), %v3836_v43, %v336_v44  ;;  %v511_v55 = vld [vmem:[%s4266_s3 + $0x60] sm:$0xff] (!%p239_p9)  ;;  %v3438_v62 = vpack.c.bf16 (!%p239_p9), %v592_v58, %v591_v57  ;;  %v513_v63 = vld [vmem:[%s4266_s3 + $0x70] sm:$0xff] (!%p239_p9)  ;;  %v753_v16 = vld [vmem:[%s4266_s3 + $0xe8] sm:$0xff] (!%p239_p9) }
  0x14   : > { %v3430_v61 = vpack.c.bf16 (!%p239_p9), %v512_v56, %v511_v55  ;;  %v673_v15 = vld [vmem:[%s4266_s3 + $0xc0] sm:$0xff] (!%p239_p9)  ;;  %v829_v17 = vld [vmem:[%s4266_s3 + $0xf0] sm:$0xff] (!%p239_p9)  ;;  %v830_v18 = vld [vmem:[%s4266_s3 + $0xf8] sm:$0xff] (!%p239_p9) }
  0x15   : > { %s4277_s9 = smov (!%p279_p10, %s2948_s9), 3  ;;  %3417 = vmatpush3.bf16.msra.mxu0 %v3414_v23  ;;  %v909_v19 = vld [vmem:[%s4266_s3 + $0x118] sm:$0xff]  ;;  %v910_v20 = vld [vmem:[%s4266_s3 + $0x120] sm:$0xff]  ;;  %v3458_v21 = vpack.c.bf16 %v830_v18, %v829_v17  ;;  %v832_v23 = vld [vmem:[%s4266_s3 + $0x108] sm:$0xff] }
  0x16   : > { %s3770_s10 = sshll.u32 %s4277_s9, 3  ;;  %3425 = vmatpush3.bf16.msra.mxu1 %v3422_v25  ;;  %3152 = vmatprep.subr.mxu0 %v346_v26  ;;  %v831_v22 = vld [vmem:[%s4266_s3 + $0x100] sm:$0xff]  ;;  %v3466_v24 = vpack.c.bf16 %v910_v20, %v909_v19  ;;  %v911_v25 = vld [vmem:[%s4266_s3 + $0x128] sm:$0xff]  ;;  %v833_v29 = vld [vmem:[%s4266_s3 + $0x110] sm:$0xff]  ;;  %s275_s9 = sand.u32 1, %s3671_s22  }
  0x17   : > { %s282_s13 = scalar_lea.vmem %s4263_s0, %s3770_s10  ;;  %3165 = vmatprep.subr.mxu1 %v433_v27  ;;  %v913_v30 = vld [vmem:[%s4266_s3 + $0x138] sm:$0xff]  ;;  %v989_v31 = vld [vmem:[%s4267_s4] sm:$0xff]  ;;  %v991_v36 = vld [vmem:[%s4267_s4 + $0x10] sm:$0xff]  ;;  %s288_s12 = scalar_lea.vmem %s4264_s1, %s3770_s10 }
  0x18   : > { %v3776_v0 = vld [vmem:[%s282_s13] sm:$0xff]  ;;  %v3780_v2 = vld [vmem:[%s282_s13 + $0x8] sm:$0xff]  ;;  %v1232_v57 = vld [vmem:[%s4267_s4 + $0x90] sm:$0xff]  ;;  %s294_s15 = scalar_lea.vmem %s4265_s2, %s3770_s10  ;;  %s2947_s11 = sshll.u32 %s275_s9, 4 }
  0x19   : > { %v301_v1 = vsel %vm300_vm0, %v3776_v0, 0.0  ;;  %v304_v3 = vsel %vm300_vm0, %v3780_v2, 0.0  ;;  %3153 = vmatpush3.msra.mxu0 %v346_v26  ;;  %v912_v26 = vld [vmem:[%s4266_s3 + $0x130] sm:$0xff]  ;;  %v1231_v56 = vld [vmem:[%s4267_s4 + $0x88] sm:$0xff]  ;;  %s4222_s25 = scalar_lea.sflag [#allocation3], %s275_s9 }
  0x1a   : > { %302 = vadd.xlane.f32.xlu0 %v301_v1  ;;  %3166 = vmatpush3.msra.mxu1 %v433_v27  ;;  %v593_v1 = vld [vmem:[%s4266_s3 + $0x98] sm:$0xff]  ;;  %v3462_v27 = vpack.c.bf16 %v832_v23, %v831_v22  ;;  %v3470_v28 = vpack.c.bf16 %v912_v26, %v911_v25  ;;  %v1311_v25 = vld [vmem:[%s294_s15] sm:$0xff] }
  0x1b   : > { %3427 = vmatprep.subr.bf16.mxu0 %v3426_v32  ;;  %3435 = vmatprep.subr.bf16.mxu1 %v3434_v33 }
  0x1e   : > { %305 = vadd.xlane.f32.xlu0 %v304_v3  ;;  %v669_v3 = vld [vmem:[%s4266_s3 + $0xa0] sm:$0xff] }
  0xa7   : > { %v303_v4 = vpop.xlane.xlu0 %302 }
  0xa8   : > { %v308_v5 = vmul.f32 0.03125, %v303_v4  ;;  %v670_v4 = vld [vmem:[%s4266_s3 + $0xa8] sm:$0xff] }
  0xaa   : > { %v310_v6 = vsub.f32 %v3776_v0, %v308_v5  ;;  %v749_v5 = vld [vmem:[%s4266_s3 + $0xc8] sm:$0xff] }
  0xab   : > { %v306_v7 = vpop.xlane.xlu0 %305 }
  0xac   : > { %v309_v8 = vmul.f32 0.03125, %v306_v7  ;;  %v312_v9 = vmul.f32 %v310_v6, %v310_v6  ;;  %v671_v7 = vld [vmem:[%s4266_s3 + $0xb0] sm:$0xff] }
  0xae   : > { %v311_v10 = vsub.f32 %v3780_v2, %v309_v8  ;;  %v314_v11 = vsel %vm300_vm0, %v312_v9, 0.0  ;;  %v3442_v8 = vpack.c.bf16 %v670_v4, %v669_v3 }
  0xaf   : > { %315 = vadd.xlane.f32.xlu1 %v314_v11  ;;  %v751_v11 = vld [vmem:[%s4266_s3 + $0xd8] sm:$0xff] }
  0xb0   : > { %v313_v12 = vmul.f32 %v311_v10, %v311_v10 }
  0xb2   : > { %v317_v13 = vsel %vm300_vm0, %v313_v12, 0.0  ;;  %v752_v12 = vld [vmem:[%s4266_s3 + $0xe0] sm:$0xff] }
  0xb3   : > { %318 = vadd.xlane.f32.xlu1 %v317_v13  ;;  %v3454_v14 = vpack.c.bf16 %v752_v12, %v751_v11 }
 0x13c   : > { %v316_v34 = vpop.xlane.xlu1 %315 }
 0x13d   : > { %v320_v35 = vmul.f32 0.03125, %v316_v34  ;;  %v1070_v34 = vld [vmem:[%s4267_s4 + $0x30] sm:$0xff] }
 0x13f   : > { %v322_v37 = vadd.f32 1e-05, %v320_v35 }
 0x140   : > { %v319_v38 = vpop.xlane.xlu1 %318 }
 0x141   : > { %3573 = vrsqrt.f32 %v322_v37  ;;  %v321_v39 = vmul.f32 0.03125, %v319_v38  ;;  %v992_v37 = vld [vmem:[%s4267_s4 + $0x18] sm:$0xff] }
 0x142   : > { %v3478_v42 = vpack.c.bf16 %v992_v37, %v991_v36  ;;  %v1312_v36 = vld [vmem:[%s294_s15 + $0x8] sm:$0xff] }
 0x143   : > { %v323_v41 = vadd.f32 1e-05, %v321_v39  ;;  %v1071_v39 = vld [vmem:[%s4267_s4 + $0x38] sm:$0xff] }
 0x145   : > { %3575 = vrsqrt.f32 %v323_v41  ;;  %v1072_v41 = vld [vmem:[%s4267_s4 + $0x40] sm:$0xff] }
 0x146   : > { %v3486_v44 = vpack.c.bf16 %v1072_v41, %v1071_v39 }
 0x14b   : > { %v3574_v46 = vpop.eup %3573 }
 0x14c   : > { %v326_v48 = vmul.f32 %v3574_v46, %v310_v6  ;;  %v750_v6 = vld [vmem:[%s4266_s3 + $0xd0] sm:$0xff]  ;;  %v1073_v46 = vld [vmem:[%s4267_s4 + $0x48] sm:$0xff] }
 0x14d   : > { %v3450_v9 = vpack.c.bf16 %v750_v6, %v749_v5 }
 0x14e   : > { %v332_v49 = vmul.f32 %v331_v45, %v326_v48  ;;  %v1150_v48 = vld [vmem:[%s4267_s4 + $0x58] sm:$0xff] }
 0x14f   : > { %v3576_v50 = vpop.eup %3575 }
 0x150   : > { %v338_v51 = vadd.f32 %v337_v47, %v332_v49  ;;  %v327_v52 = vmul.f32 %v3576_v50, %v311_v10  ;;  %v672_v10 = vld [vmem:[%s4266_s3 + $0xb8] sm:$0xff]  ;;  %v1230_v50 = vld [vmem:[%s4267_s4 + $0x80] sm:$0xff] }
 0x151   : > { %v3446_v13 = vpack.c.bf16 %v672_v10, %v671_v7  ;;  %v1229_v49 = vld [vmem:[%s4267_s4 + $0x78] sm:$0xff] }
 0x152   : > { %v3842_v53 = vsel %vm300_vm0, %v338_v51, 1.0  ;;  %v333_v54 = vmul.f32 %v331_v45, %v327_v52  ;;  %v993_v45 = vld [vmem:[%s4267_s4 + $0x20] sm:$0xff]  ;;  %v3498_v55 = vpack.c.bf16 %v1230_v50, %v1229_v49 }
 0x153   : > { %3154 = vmatprep.mubr.msk.f32.mxu0 %vm347_vm1, %v3842_v53  ;;  %3167 = vmatprep.mubr.msk.f32.mxu1 %vm347_vm1, %v3842_v53  ;;  %v1151_v52 = vld [vmem:[%s4267_s4 + $0x60] sm:$0xff] }
 0x154   : > { %v339_v59 = vadd.f32 %v337_v47, %v333_v54  ;;  %v1149_v47 = vld [vmem:[%s4267_s4 + $0x50] sm:$0xff]  ;;  %v1152_v54 = vld [vmem:[%s4267_s4 + $0x68] sm:$0xff] }
 0x155   : > { %v3490_v51 = vpack.c.bf16 %v1150_v48, %v1149_v47  ;;  %v3494_v58 = vpack.c.bf16 %v1152_v54, %v1151_v52 }
 0x156   : > { %v3861_v60 = vsel %vm300_vm0, %v339_v59, 1.0  ;;  %v3502_v59 = vpack.c.bf16 %v1232_v57, %v1231_v56 }
 0x157   : > { %3155 = vmatmul.mubr.msk.f32.vlgmr.msra.gmra.mrb[0].mxu0 %vm347_vm1, %v3861_v60  ;;  %3168 = vmatmul.mubr.msk.f32.vlgmr.msra.gmra.mrb[0].mxu1 %vm347_vm1, %v3861_v60 }
 0x158   : > { %3429 = vmatpush3.bf16.msra.mxu0 %v3426_v32  ;;  %3437 = vmatpush3.bf16.msra.mxu1 %v3434_v33  ;;  %v990_v32 = vld [vmem:[%s4267_s4 + $0x8] sm:$0xff] }
 0x159   : > { %3180 = vmatprep.mubr.msk.f32.mxu0 %vm347_vm1, %v3842_v53  ;;  %3193 = vmatprep.mubr.msk.f32.mxu1 %vm347_vm1, %v3842_v53  ;;  %v1069_v33 = vld [vmem:[%s4267_s4 + $0x28] sm:$0xff]  ;;  %v3474_v35 = vpack.c.bf16 %v990_v32, %v989_v31 }
 0x15a   : > { %3431 = vmatprep.subr.bf16.mxu0 %v3430_v61  ;;  %3439 = vmatprep.subr.bf16.mxu1 %v3438_v62  ;;  %v3482_v38 = vpack.c.bf16 %v1070_v34, %v1069_v33 }
 0x15c   : > { %3433 = vmatpush3.bf16.msra.mxu0 %v3430_v61  ;;  %3441 = vmatpush3.bf16.msra.mxu1 %v3438_v62  ;;  %v1153_v61 = vld [vmem:[%s4267_s4 + $0x70] sm:$0xff]  ;;  %v1233_v62 = vld [vmem:[%s4267_s4 + $0x98] sm:$0xff] }
 0x15d   : > { %3178 = vmatprep.subr.mxu0 %v513_v63  ;;  %3191 = vmatprep.subr.mxu1 %v593_v1 }
 0x160   : > { %3179 = vmatpush3.msra.mxu0 %v513_v63  ;;  %3192 = vmatpush3.msra.mxu1 %v593_v1 }
 0x161   : > { %3181 = vmatmul.mubr.msk.f32.vlgmr.msra.gmra.mrb[2].mxu0 %vm347_vm1, %v3861_v60  ;;  %3194 = vmatmul.mubr.msk.f32.vlgmr.msra.gmra.mrb[2].mxu1 %vm347_vm1, %v3861_v60 }
 0x162   : > { %3443 = vmatprep.subr.bf16.mxu0 %v3442_v8  ;;  %3451 = vmatprep.subr.bf16.mxu1 %v3450_v9 }
 0x163   : > { %3445 = vmatpush3.bf16.msra.mxu0 %v3442_v8  ;;  %3206 = vmatprep.mubr.msk.f32.mxu0 %vm347_vm1, %v3842_v53 }
 0x164   : > { %3453 = vmatpush3.bf16.msra.mxu1 %v3450_v9  ;;  %3219 = vmatprep.mubr.msk.f32.mxu1 %vm347_vm1, %v3842_v53 }
 0x165   : > { %3447 = vmatprep.subr.bf16.mxu0 %v3446_v13  ;;  %3455 = vmatprep.subr.bf16.mxu1 %v3454_v14 }
 0x167   : > { %3449 = vmatpush3.bf16.msra.mxu0 %v3446_v13 }
 0x168   : > { %3457 = vmatpush3.bf16.msra.mxu1 %v3454_v14  ;;  %3204 = vmatprep.subr.mxu0 %v673_v15 }
 0x169   : > { %3217 = vmatprep.subr.mxu1 %v753_v16 }
 0x16b   : > { %3205 = vmatpush3.msra.mxu0 %v673_v15 }
 0x16c   : > { %3218 = vmatpush3.msra.mxu1 %v753_v16  ;;  %3207 = vmatmul.mubr.msk.f32.vlgmr.msra.gmra.mrb[4].mxu0 %vm347_vm1, %v3861_v60 }
 0x16d   : > { %3220 = vmatmul.mubr.msk.f32.vlgmr.msra.gmra.mrb[4].mxu1 %vm347_vm1, %v3861_v60  ;;  %3459 = vmatprep.subr.bf16.mxu0 %v3458_v21 }
 0x16e   : > { %3467 = vmatprep.subr.bf16.mxu1 %v3466_v24  ;;  %3461 = vmatpush3.bf16.msra.mxu0 %v3458_v21 }
 0x16f   : > { %3232 = vmatprep.mubr.msk.f32.mxu0 %vm347_vm1, %v3842_v53  ;;  %3469 = vmatpush3.bf16.msra.mxu1 %v3466_v24  ;;  %v1309_v24 = vld [vmem:[%s288_s12] sm:$0xff] }
 0x170   : > { %3245 = vmatprep.mubr.msk.f32.mxu1 %vm347_vm1, %v3842_v53  ;;  %3463 = vmatprep.subr.bf16.mxu0 %v3462_v27  ;;  %v1313_v26 = vadd.f32 %v1311_v25, %v1309_v24 }
 0x171   : > { %3471 = vmatprep.subr.bf16.mxu1 %v3470_v28 }
 0x172   : > { %3465 = vmatpush3.bf16.msra.mxu0 %v3462_v27 }
 0x173   : > { %3473 = vmatpush3.bf16.msra.mxu1 %v3470_v28  ;;  %3230 = vmatprep.subr.mxu0 %v833_v29 }
 0x174   : > { %3243 = vmatprep.subr.mxu1 %v913_v30 }
 0x176   : > { %3231 = vmatpush3.msra.mxu0 %v833_v29 }
 0x177   : > { %3244 = vmatpush3.msra.mxu1 %v913_v30  ;;  %3233 = vmatmul.mubr.msk.f32.vlgmr.msra.gmra.mrb[6].mxu0 %vm347_vm1, %v3861_v60 }
 0x178   : > { %3246 = vmatmul.mubr.msk.f32.vlgmr.msra.gmra.mrb[6].mxu1 %vm347_vm1, %v3861_v60  ;;  %3475 = vmatprep.subr.bf16.mxu0 %v3474_v35 }
 0x179   : > { %3483 = vmatprep.subr.bf16.mxu1 %v3482_v38  ;;  %3477 = vmatpush3.bf16.msra.mxu0 %v3474_v35  ;;  %v1310_v35 = vld [vmem:[%s288_s12 + $0x8] sm:$0xff]  ;;  %s277_s12 = scalar_lea.vmem [#allocation2], %s2947_s11 }
 0x17a   : > { %3258 = vmatprep.mubr.msk.f32.mxu0 %vm347_vm1, %v3842_v53  ;;  %3485 = vmatpush3.bf16.msra.mxu1 %v3482_v38  ;;  %s2857_s13 = sshll.u32 %s277_s12, 4  ;;  %s4217_s13 = int_to_ptr.vmem [resolvable:$true] %s2857_s13 }
 0x17b   : > { %3271 = vmatprep.mubr.msk.f32.mxu1 %vm347_vm1, %v3842_v53  ;;  %3479 = vmatprep.subr.bf16.mxu0 %v3478_v42  ;;  %s3617_s17 = scalar_lea.vmem %s4217_s13, 256  ;;  %p3624_p0 = scmp.lt.s32.totalorder %s4217_s13, %s3622_s19 }
 0x17c   : > { %3487 = vmatprep.subr.bf16.mxu1 %v3486_v44  ;;  %p3618_p11 = scmp.ne.s32.totalorder %s4217_s13, %s3617_s17  ;;  %p3625_p1 = scmp.lt.s32.totalorder %s3623_s20, %s3617_s17 }
 0x17d   : > { %3481 = vmatpush3.bf16.msra.mxu0 %v3478_v42  ;;  %v1314_v42 = vadd.f32 %v1312_v36, %v1310_v35 }
 0x17e   : > { %3489 = vmatpush3.bf16.msra.mxu1 %v3486_v44  ;;  %3256 = vmatprep.subr.mxu0 %v993_v45  ;;  %p3619_p12 = pnand %p3618_p11, %p3759_p5  ;;  %p3626_p2 = por %p3625_p1, %p3624_p0 }
 0x17f   : > { %3269 = vmatprep.subr.mxu1 %v1073_v46 }
 0x180   : > { %p3620_p13 = pneg %p3619_p12 }
 0x181   : > { %3257 = vmatpush3.msra.mxu0 %v993_v45 }
 0x182   : > { %3270 = vmatpush3.msra.mxu1 %v1073_v46  ;;  %3259 = vmatmul.mubr.msk.f32.vlgmr.msra.gmra.mrb[8].mxu0 %vm347_vm1, %v3861_v60  ;;  %p3627_p3 = pnand %p3626_p2, %p3620_p13 }
 0x183   : > { %3272 = vmatmul.mubr.msk.f32.vlgmr.msra.gmra.mrb[8].mxu1 %vm347_vm1, %v3861_v60  ;;  %3491 = vmatprep.subr.bf16.mxu0 %v3490_v51 }
 0x184   : > { %3499 = vmatprep.subr.bf16.mxu1 %v3498_v55  ;;  %3493 = vmatpush3.bf16.msra.mxu0 %v3490_v51 }
 0x185   : > { %3284 = vmatprep.mubr.msk.f32.mxu0 %vm347_vm1, %v3842_v53  ;;  %3501 = vmatpush3.bf16.msra.mxu1 %v3498_v55 }
 0x186   : > { %3297 = vmatprep.mubr.msk.f32.mxu1 %vm347_vm1, %v3842_v53  ;;  %3495 = vmatprep.subr.bf16.mxu0 %v3494_v58  ;;  %v3681_v53 = vmov 0.0  }
 0x187   : > { %3503 = vmatprep.subr.bf16.mxu1 %v3502_v59 }
 0x188   : > { %3497 = vmatpush3.bf16.msra.mxu0 %v3494_v58 }
 0x189   : > { %3505 = vmatpush3.bf16.msra.mxu1 %v3502_v59  ;;  %3282 = vmatprep.subr.mxu0 %v1153_v61 }
 0x18a   : > { %3295 = vmatprep.subr.mxu1 %v1233_v62 }
 0x18c   : > { %3283 = vmatpush3.msra.mxu0 %v1153_v61 }
 0x18d   : > { %3296 = vmatpush3.msra.mxu1 %v1233_v62  ;;  %3285 = vmatmul.mubr.msk.f32.vlgmr.msra.gmra.mrb[10].mxu0 %vm347_vm1, %v3861_v60 }
 0x18e   : > { %3298 = vmatmul.mubr.msk.f32.vlgmr.msra.gmra.mrb[10].mxu1 %vm347_vm1, %v3861_v60  ;;  %3300 = vmatprep.subr.mxu0 %v3681_v53 }
 0x18f   : > { %3302 = vmatprep.mubr.msk.f32.mxu0 %vm3682_vm2, %v3681_v53  ;;  %3315 = vmatprep.subr.mxu1 %v3681_v53 }
 0x190   : > { %3317 = vmatprep.mubr.msk.f32.mxu1 %vm3682_vm2, %v3681_v53 }
 0x22a   : > { %v3156_v63 = vpop.f32.mrb[0].mxu0  ;;  %v3169_v1 = vpop.f32.mrb[0].mxu1 }
 0x22b   : > { %v420_v3 = vpop.f32.mrb[1].mxu0  ;;  %v500_v4 = vpop.f32.mrb[1].mxu1 }
 0x234   : > { %v3182_v5 = vpop.f32.mrb[2].mxu0  ;;  %v3195_v6 = vpop.f32.mrb[2].mxu1 }
 0x235   : > { %v580_v7 = vpop.f32.mrb[3].mxu0  ;;  %v660_v60 = vpop.f32.mrb[3].mxu1 }
 0x23f   : > { %v3208_v8 = vpop.f32.mrb[4].mxu0 }
 0x240   : > { %v3221_v9 = vpop.f32.mrb[4].mxu1  ;;  %v740_v10 = vpop.f32.mrb[5].mxu0 }
 0x241   : > { %v820_v11 = vpop.f32.mrb[5].mxu1  ;;  %3301 = vmatpush3.xpose.msk.msra.mxu0 %vm1315_vm3, %v740_v10 }
 0x242   : > { %3305 = vmatprep.subr.mxu0 %v3681_v53 }
 0x244   : > { %3303 = vmatmul.mubr.msk.f32.vlgmr.msra.gmra.mrb[12].mxu0 %vm1315_vm3, %v420_v3 }
 0x245   : > { %3306 = vmatpush3.xpose.msk.msra.mxu0 %vm1315_vm3, %v820_v11  ;;  %3307 = vmatprep.mubr.msk.f32.mxu0 %vm3682_vm2, %v3681_v53 }
 0x246   : > { %3310 = vmatprep.subr.mxu0 %v3681_v53 }
 0x248   : > { %3308 = vmatmul.mubr.msk.f32.vlgmr.msra.gmra.mrb[14].mxu0 %vm1315_vm3, %v500_v4 }
 0x249   : > { %3312 = vmatprep.mubr.msk.f32.mxu0 %vm3682_vm2, %v3681_v53 }
 0x24a   : > { %v3234_v12 = vpop.f32.mrb[6].mxu0 }
 0x24b   : > { %v3247_v13 = vpop.f32.mrb[6].mxu1  ;;  %v900_v14 = vpop.f32.mrb[7].mxu0 }
 0x24c   : > { %v980_v15 = vpop.f32.mrb[7].mxu1  ;;  %3311 = vmatpush3.xpose.msk.msra.mxu0 %vm1315_vm3, %v900_v14 }
 0x24d   : > { %3316 = vmatpush3.xpose.msk.msra.mxu1 %vm1315_vm3, %v980_v15  ;;  %3320 = vmatprep.subr.mxu0 %v3681_v53 }
 0x24e   : > { %3325 = vmatprep.subr.mxu1 %v3681_v53 }
 0x24f   : > { %3313 = vmatmul.mubr.msk.f32.vlgmr.msra.gmra.mrb[16].mxu0 %vm1315_vm3, %v580_v7 }
 0x250   : > { %3318 = vmatmul.mubr.msk.f32.vlgmr.msra.gmra.mrb[12].mxu1 %vm1315_vm3, %v660_v60  ;;  %3321 = vmatpush3.xpose.msk.msra.mxu0 %vm1315_vm3, %v3208_v8 }
 0x251   : > { %3326 = vmatpush3.xpose.msk.msra.mxu1 %vm1315_vm3, %v3221_v9  ;;  %3322 = vmatprep.mubr.msk.f32.mxu0 %vm3682_vm2, %v3681_v53 }
 0x252   : > { %3327 = vmatprep.mubr.msk.f32.mxu1 %vm3682_vm2, %v3681_v53  ;;  %3330 = vmatprep.subr.mxu0 %v3681_v53 }
 0x253   : > { %3323 = vmatmul.mubr.msk.f32.vlgmr.msra.gmra.mrb[18].mxu0 %vm1315_vm3, %v3156_v63  ;;  %3335 = vmatprep.subr.mxu1 %v3681_v53 }
 0x254   : > { %3328 = vmatmul.mubr.msk.f32.vlgmr.msra.gmra.mrb[14].mxu1 %vm1315_vm3, %v3169_v1  ;;  %3331 = vmatpush3.xpose.msk.msra.mxu0 %vm1315_vm3, %v3234_v12 }
 0x255   : > { %v4066_v16 = vpop.f32.mrb[8].mxu0  ;;  %3336 = vmatpush3.xpose.msk.msra.mxu1 %vm1315_vm3, %v3247_v13  ;;  %3332 = vmatprep.mubr.msk.f32.mxu0 %vm3682_vm2, %v3681_v53 }
 0x256   : > { %v4071_v17 = vpop.f32.mrb[8].mxu1  ;;  %v1060_v18 = vpop.f32.mrb[9].mxu0  ;;  %3337 = vmatprep.mubr.msk.f32.mxu1 %vm3682_vm2, %v3681_v53  ;;  %3340 = vmatprep.subr.mxu0 %v3681_v53 }
 0x257   : > { %v1140_v19 = vpop.f32.mrb[9].mxu1  ;;  %3333 = vmatmul.mubr.msk.f32.vlgmr.msra.gmra.mrb[20].mxu0 %vm1315_vm3, %v3182_v5  ;;  %3345 = vmatprep.subr.mxu1 %v3681_v53 }
 0x258   : > { %3338 = vmatmul.mubr.msk.f32.vlgmr.msra.gmra.mrb[16].mxu1 %vm1315_vm3, %v3195_v6  ;;  %3341 = vmatpush3.msra.mxu0 %v1140_v19 }
 0x259   : > { %3346 = vmatpush3.msra.mxu1 %v1060_v18  ;;  %3347 = vmatprep.mubr.msk.f32.mxu1 %vm3682_vm2, %v3681_v53 }
 0x25a   : > { %3355 = vmatprep.subr.mxu1 %v3681_v53  ;;  %3342 = vmatprep.mubr.msk.f32.mxu0 %vm3682_vm2, %v3681_v53 }
 0x25b   : > { %3350 = vmatprep.subr.mxu0 %v3681_v53 }
 0x260   : > { %v4085_v20 = vpop.f32.mrb[10].mxu0 }
 0x261   : > { %v4087_v21 = vpop.f32.mrb[10].mxu1  ;;  %v4089_v22 = vpop.f32.mrb[11].mxu0 }
 0x262   : > { %v4091_v23 = vpop.f32.mrb[11].mxu1 }
 0x317   : > { %v1388_v27 = vpop.f32.mrb[12].mxu0 }
 0x318   : > { %v1389_v28 = vadd.f32 %v1388_v27, %v1313_v26  ;;  %v3304_v29 = vpop.f32.mrb[13].mxu0 }
 0x31a   : > { %v1924_v30 = vsel %vm1315_vm3, %v1389_v28, -inf }
 0x31b   : > { %1925 = vmax.xlane.f32.xlu1 %v1924_v30  ;;  %v1464_v31 = vpop.f32.mrb[14].mxu0 }
 0x31c   : > { %v1465_v32 = vadd.f32 %v1464_v31, %v1313_v26  ;;  %v3309_v33 = vpop.f32.mrb[15].mxu0 }
 0x31e   : > { %v1927_v34 = vsel %vm1315_vm3, %v1465_v32, -inf }
 0x31f   : > { %1928 = vmax.xlane.f32.xlu0 %v1927_v34 }
 0x322   : > { %v1540_v37 = vpop.f32.mrb[16].mxu0 }
 0x323   : > { %v1541_v38 = vadd.f32 %v1540_v37, %v1313_v26  ;;  %v1616_v39 = vpop.f32.mrb[12].mxu1  ;;  %v3314_v41 = vpop.f32.mrb[17].mxu0 }
 0x324   : > { %v1617_v44 = vadd.f32 %v1616_v39, %v1313_v26  ;;  %v3319_v45 = vpop.f32.mrb[13].mxu1 }
 0x325   : > { %v1930_v46 = vsel %vm1315_vm3, %v1541_v38, -inf }
 0x326   : > { %v1933_v47 = vsel %vm1315_vm3, %v1617_v44, -inf  ;;  %1931 = vmax.xlane.f32.xlu0 %v1930_v46  ;;  %v1692_v48 = vpop.f32.mrb[18].mxu0 }
 0x327   : > { %v1768_v49 = vpop.f32.mrb[14].mxu1  ;;  %1934 = vmax.xlane.f32.xlu1 %v1933_v47  ;;  %v1693_v50 = vadd.f32 %v1692_v48, %v1314_v42  ;;  %v3324_v51 = vpop.f32.mrb[19].mxu0 }
 0x328   : > { %v1769_v52 = vadd.f32 %v1768_v49, %v1314_v42  ;;  %v3329_v54 = vpop.f32.mrb[15].mxu1 }
 0x329   : > { %v1936_v55 = vsel %vm1315_vm3, %v1693_v50, -inf }
 0x32a   : > { %v1939_v56 = vsel %vm1315_vm3, %v1769_v52, -inf  ;;  %v1844_v57 = vpop.f32.mrb[20].mxu0 }
 0x32b   : > { %v1920_v58 = vpop.f32.mrb[16].mxu1  ;;  %1940 = vmax.xlane.f32.xlu0 %v1939_v56  ;;  %1937 = vmax.xlane.f32.xlu1 %v1936_v55  ;;  %v1845_v59 = vadd.f32 %v1844_v57, %v1314_v42  ;;  %v3334_v61 = vpop.f32.mrb[21].mxu0 }
 0x32c   : > { %v1921_v62 = vadd.f32 %v1920_v58, %v1314_v42  ;;  %v3339_v63 = vpop.f32.mrb[17].mxu1 }
 0x32d   : > { %v1942_v1 = vsel %vm1315_vm3, %v1845_v59, -inf }
 0x32e   : > { %v1945_v3 = vsel %vm1315_vm3, %v1921_v62, -inf }
 0x32f   : > { %1946 = vmax.xlane.f32.xlu1 %v1945_v3  ;;  %1943 = vmax.xlane.f32.xlu0 %v1942_v1 }
 0x3a8   : > { %v1926_v4 = vpop.xlane.xlu1 %1925 }
 0x3a9   : > { %v1948_v5 = vsub.f32 %v1389_v28, %v1926_v4 }
 0x3ab   : > { %v1956_v6 = vmul.f32 1.442695, %v1948_v5 }
 0x3ac   : > { %v1929_v7 = vpop.xlane.xlu0 %1928 }
 0x3ad   : > { %3577 = vpow2.f32 %v1956_v6  ;;  %v1949_v60 = vsub.f32 %v1465_v32, %v1929_v7 }
 0x3af   : > { %v1958_v8 = vmul.f32 1.442695, %v1949_v60 }
 0x3b1   : > { %3579 = vpow2.f32 %v1958_v8 }
 0x3b3   : > { %v1932_v9 = vpop.xlane.xlu0 %1931 }
 0x3b4   : > { %v1935_v10 = vpop.xlane.xlu1 %1934  ;;  %v1950_v11 = vsub.f32 %v1541_v38, %v1932_v9 }
 0x3b5   : > { %v1951_v12 = vsub.f32 %v1617_v44, %v1935_v10 }
 0x3b6   : > { %v1960_v13 = vmul.f32 1.442695, %v1950_v11 }
 0x3b7   : > { %v3578_v14 = vpop.eup %3577  ;;  %v1962_v15 = vmul.f32 1.442695, %v1951_v12 }
 0x3b8   : > { %3581 = vpow2.f32 %v1960_v13  ;;  %v1941_v18 = vpop.xlane.xlu0 %1940  ;;  %v1938_v19 = vpop.xlane.xlu1 %1937  ;;  %v1972_v24 = vsel %vm1315_vm3, %v3578_v14, 0.0 }
 0x3b9   : > { %3583 = vpow2.f32 %v1962_v15  ;;  %v1953_v25 = vsub.f32 %v1769_v52, %v1941_v18  ;;  %v1952_v26 = vsub.f32 %v1693_v50, %v1938_v19  ;;  %1973 = vadd.xlane.f32.xlu1 %v1972_v24 }
 0x3bb   : > { %v3580_v27 = vpop.eup %3579  ;;  %v1966_v28 = vmul.f32 1.442695, %v1953_v25  ;;  %v1964_v29 = vmul.f32 1.442695, %v1952_v26 }
 0x3bc   : > { %v1947_v30 = vpop.xlane.xlu1 %1946  ;;  %v1944_v31 = vpop.xlane.xlu0 %1943  ;;  %v1975_v32 = vsel %vm1315_vm3, %v3580_v27, 0.0 }
 0x3bd   : > { %3585 = vpow2.f32 %v1966_v28  ;;  %v1955_v33 = vsub.f32 %v1921_v62, %v1947_v30  ;;  %v1954_v34 = vsub.f32 %v1845_v59, %v1944_v31  ;;  %1976 = vadd.xlane.f32.xlu0 %v1975_v32 }
 0x3be   : > { %3587 = vpow2.f32 %v1964_v29 }
 0x3bf   : > { %v1970_v35 = vmul.f32 1.442695, %v1955_v33  ;;  %v1968_v36 = vmul.f32 1.442695, %v1954_v34 }
 0x3c1   : > { %3589 = vpow2.f32 %v1970_v35 }
 0x3c2   : > { %v3582_v37 = vpop.eup %3581  ;;  %3591 = vpow2.f32 %v1968_v36 }
 0x3c3   : > { %v3584_v38 = vpop.eup %3583  ;;  %v1978_v39 = vsel %vm1315_vm3, %v3582_v37, 0.0 }
 0x3c4   : > { %v1981_v41 = vsel %vm1315_vm3, %v3584_v38, 0.0  ;;  %1979 = vadd.xlane.f32.xlu0 %v1978_v39 }
 0x3c5   : > { %1982 = vadd.xlane.f32.xlu1 %v1981_v41 }
 0x3c7   : > { %v3586_v42 = vpop.eup %3585 }
 0x3c8   : > { %v3588_v44 = vpop.eup %3587  ;;  %v1987_v45 = vsel %vm1315_vm3, %v3586_v42, 0.0 }
 0x3c9   : > { %v1984_v46 = vsel %vm1315_vm3, %v3588_v44, 0.0  ;;  %1988 = vadd.xlane.f32.xlu0 %v1987_v45 }
 0x3ca   : > { %1985 = vadd.xlane.f32.xlu1 %v1984_v46 }
 0x3cb   : > { %v3590_v47 = vpop.eup %3589 }
 0x3cc   : > { %v3592_v48 = vpop.eup %3591  ;;  %v1993_v49 = vsel %vm1315_vm3, %v3590_v47, 0.0 }
 0x3cd   : > { %v1990_v50 = vsel %vm1315_vm3, %v3592_v48, 0.0 }
 0x3ce   : > { %1994 = vadd.xlane.f32.xlu1 %v1993_v49  ;;  %1991 = vadd.xlane.f32.xlu0 %v1990_v50 }
 0x446   : > { %v1974_v51 = vpop.xlane.xlu1 %1973 }
 0x447   : > { %3593 = vrcp.f32 %v1974_v51 }
 0x44a   : > { %v1977_v52 = vpop.xlane.xlu0 %1976 }
 0x44b   : > { %3595 = vrcp.f32 %v1977_v52 }
 0x451   : > { %v3594_v54 = vpop.eup %3593  ;;  %v1980_v55 = vpop.xlane.xlu0 %1979 }
 0x452   : > { %v2004_v56 = vmul.f32 %v3594_v54, %v3578_v14  ;;  %v1983_v57 = vpop.xlane.xlu1 %1982  ;;  %3597 = vrcp.f32 %v1980_v55  ;;  %v2646_v54 = vld [vmem:[%s4268_s5] sm:$0xff]  ;;  %v2647_v55 = vld [vmem:[%s4268_s5 + $0x8] sm:$0xff] }
 0x453   : > { %3599 = vrcp.f32 %v1983_v57  ;;  %v2648_v57 = vld [vmem:[%s4268_s5 + $0x10] sm:$0xff] }
 0x454   : > { %3348 = vmatmul.mubr.msk.f32.vlgmr.msra.gmra.mrb[18].mxu1 %vm1315_vm3, %v2004_v56  ;;  %v3506_v56 = vpack.c.bf16 %v2647_v55, %v2646_v54 }
 0x455   : > { %v3596_v58 = vpop.eup %3595  ;;  %3356 = vmatpush3.msra.mxu1 %v4091_v23  ;;  %3357 = vmatprep.mubr.msk.f32.mxu1 %vm3682_vm2, %v3681_v53 }
 0x456   : > { %v2005_v59 = vmul.f32 %v3596_v58, %v3580_v27  ;;  %v1989_v61 = vpop.xlane.xlu0 %1988  ;;  %3365 = vmatprep.subr.mxu1 %v3681_v53  ;;  %v2649_v58 = vld [vmem:[%s4268_s5 + $0x18] sm:$0xff] }
 0x457   : > { %v1986_v62 = vpop.xlane.xlu1 %1985  ;;  %3601 = vrcp.f32 %v1989_v61 }
 0x458   : > { %3603 = vrcp.f32 %v1986_v62  ;;  %3343 = vmatmul.mubr.msk.f32.vlgmr.msra.gmra.mrb[22].mxu0 %vm1315_vm3, %v2005_v59  ;;  %v3510_v59 = vpack.c.bf16 %v2649_v58, %v2648_v57 }
 0x459   : > { %3351 = vmatpush3.msra.mxu0 %v4089_v22  ;;  %3352 = vmatprep.mubr.msk.f32.mxu0 %vm3682_vm2, %v3681_v53 }
 0x45a   : > { %3360 = vmatprep.subr.mxu0 %v3681_v53 }
 0x45b   : > { %v1995_v23 = vpop.xlane.xlu1 %1994  ;;  %v1992_v63 = vpop.xlane.xlu0 %1991 }
 0x45c   : > { %v3598_v1 = vpop.eup %3597  ;;  %3605 = vrcp.f32 %v1995_v23 }
 0x45d   : > { %v3600_v3 = vpop.eup %3599  ;;  %v2006_v4 = vmul.f32 %v3598_v1, %v3582_v37  ;;  %3607 = vrcp.f32 %v1992_v63  ;;  %v2636_v63 = vsub.s32 3, %v3830_v40 }
 0x45e   : > { %v2007_v5 = vmul.f32 %v3600_v3, %v3584_v38 }
 0x45f   : > { %3353 = vmatmul.mubr.msk.f32.vlgmr.msra.gmra.mrb[24].mxu0 %vm1315_vm3, %v2006_v4  ;;  %v2642_v4 = vsub.s32 4, %v3830_v40 }
 0x460   : > { %3358 = vmatmul.mubr.msk.f32.vlgmr.msra.gmra.mrb[20].mxu1 %vm1315_vm3, %v2007_v5  ;;  %3361 = vmatpush3.msra.mxu0 %v4071_v17 }
 0x461   : > { %v3602_v22 = vpop.eup %3601  ;;  %3366 = vmatpush3.msra.mxu1 %v4066_v16  ;;  %3362 = vmatprep.mubr.msk.f32.mxu0 %vm3682_vm2, %v3681_v53 }
 0x462   : > { %v3604_v6 = vpop.eup %3603  ;;  %v2009_v7 = vmul.f32 %v3602_v22, %v3586_v42  ;;  %3367 = vmatprep.mubr.msk.f32.mxu1 %vm3682_vm2, %v3681_v53  ;;  %3370 = vmatprep.subr.mxu0 %v3681_v53  ;;  %v2637_v22 = vrot.slane %v3836_v43, %v2636_v63 }
 0x463   : > { %v2008_v60 = vmul.f32 %v3604_v6, %v3588_v44  ;;  %3375 = vmatprep.subr.mxu1 %v3681_v53 }
 0x464   : > { %3363 = vmatmul.mubr.msk.f32.vlgmr.msra.gmra.mrb[26].mxu0 %vm1315_vm3, %v2009_v7 }
 0x465   : > { %3368 = vmatmul.mubr.msk.f32.vlgmr.msra.gmra.mrb[22].mxu1 %vm1315_vm3, %v2008_v60  ;;  %3371 = vmatpush3.msra.mxu0 %v4085_v20  ;;  %v2643_v60 = vrot.slane %v3836_v43, %v2642_v4 }
 0x466   : > { %v3606_v16 = vpop.eup %3605  ;;  %3376 = vmatpush3.msra.mxu1 %v4087_v21  ;;  %3372 = vmatprep.mubr.msk.f32.mxu0 %vm3682_vm2, %v3681_v53  ;;  %v2602_v21 = vsub.s32 2, %v3830_v40 }
 0x467   : > { %v3608_v17 = vpop.eup %3607  ;;  %v2011_v8 = vmul.f32 %v3606_v16, %v3590_v47  ;;  %3377 = vmatprep.mubr.msk.f32.mxu1 %vm3682_vm2, %v3681_v53  ;;  %3507 = vmatprep.subr.bf16.mxu0 %v3506_v56 }
 0x468   : > { %v2010_v9 = vmul.f32 %v3608_v17, %v3592_v48  ;;  %v2603_v19 = vrot.slane %v3836_v43, %v2602_v21  ;;  %v2747_v21 = vld [vmem:[%s4267_s4 + $0xb0] sm:$0xff] }
 0x469   : > { %3378 = vmatmul.mubr.msk.f32.vlgmr.msra.gmra.mrb[24].mxu1 %vm1315_vm3, %v2011_v8 }
 0x46a   : > { %3373 = vmatmul.mubr.msk.f32.vlgmr.msra.gmra.mrb[28].mxu0 %vm1315_vm3, %v2010_v9 }
 0x46b   : > { %3509 = vmatpush3.bf16.msra.mxu0 %v3506_v56 }
 0x46c   : > { %3511 = vmatprep.subr.bf16.mxu0 %v3510_v59 }
 0x46f   : > { %3513 = vmatpush3.bf16.msra.mxu0 %v3510_v59 }
 0x527   : > { %v2154_v10 = vpop.f32.mrb[18].mxu1 }
 0x528   : > { %v3349_v11 = vpop.f32.mrb[19].mxu1 }
 0x52b   : > { %v2081_v12 = vpop.f32.mrb[22].mxu0 }
 0x52c   : > { %v2155_v20 = vadd.f32 %v2154_v10, %v2081_v12  ;;  %v3344_v13 = vpop.f32.mrb[23].mxu0  ;;  %v2745_v12 = vld [vmem:[%s4267_s4 + $0xa0] sm:$0xff] }
 0x532   : > { %v2227_v14 = vpop.f32.mrb[24].mxu0 }
 0x533   : > { %v2231_v15 = vadd.f32 %v2227_v14, %v2155_v20  ;;  %v2301_v18 = vpop.f32.mrb[20].mxu1  ;;  %v3354_v24 = vpop.f32.mrb[25].mxu0  ;;  %v2746_v20 = vld [vmem:[%s4267_s4 + $0xa8] sm:$0xff]  ;;  %v2748_v14 = vld [vmem:[%s4267_s4 + $0xb8] sm:$0xff] }
 0x534   : > { %v3359_v25 = vpop.f32.mrb[21].mxu1  ;;  %v3514_v13 = vpack.c.bf16 %v2746_v20, %v2745_v12 }
 0x535   : > { %v2305_v53 = vadd.f32 %v2301_v18, %v2231_v15  ;;  %v3518_v15 = vpack.c.bf16 %v2748_v14, %v2747_v21  ;;  %v2749_v18 = vld [vmem:[%s4267_s4 + $0xc0] sm:$0xff]  ;;  %v2751_v25 = vld [vmem:[%s4267_s4 + $0xd0] sm:$0xff] }
 0x536   : > { %3515 = vmatprep.subr.bf16.mxu1 %v3514_v13 }
 0x537   : > { %v2604_v26 = vadd.f32 %v2603_v19, %v2305_v53  ;;  %v2375_v27 = vpop.f32.mrb[26].mxu0  ;;  %3517 = vmatpush3.bf16.msra.mxu1 %v3514_v13  ;;  %v2752_v53 = vld [vmem:[%s4267_s4 + $0xd8] sm:$0xff] }
 0x538   : > { %v2448_v28 = vpop.f32.mrb[22].mxu1  ;;  %v3364_v29 = vpop.f32.mrb[27].mxu0  ;;  %3519 = vmatprep.subr.bf16.mxu1 %v3518_v15 }
 0x539   : > { %v4150_v30 = vadd.f32 %v2604_v26, %v3776_v0  ;;  %v2449_v31 = vadd.f32 %v2448_v28, %v2375_v27  ;;  %v3369_v32 = vpop.f32.mrb[23].mxu1  ;;  %v3526_v26 = vpack.c.bf16 %v2752_v53, %v2751_v25  ;;  %v2652_v27 = vsub.s32 5, %v3830_v40 }
 0x53b   : > { %v2608_v33 = vsel %vm300_vm0, %v4150_v30, 0.0  ;;  %3521 = vmatpush3.bf16.msra.mxu1 %v3518_v15  ;;  %v2653_v28 = vrot.slane %v3836_v43, %v2652_v27 }
 0x53c   : > { %v2595_v34 = vpop.f32.mrb[24].mxu1  ;;  %2609 = vadd.xlane.f32.xlu0 %v2608_v33 }
 0x53d   : > { %v2521_v35 = vpop.f32.mrb[28].mxu0  ;;  %v3379_v36 = vpop.f32.mrb[25].mxu1 }
 0x53e   : > { %v2525_v37 = vadd.f32 %v2521_v35, %v2449_v31  ;;  %v3374_v38 = vpop.f32.mrb[29].mxu0 }
 0x540   : > { %v2599_v39 = vadd.f32 %v2595_v34, %v2525_v37 }
 0x542   : > { %v2605_v41 = vadd.f32 %v2603_v19, %v2599_v39  ;;  %v2750_v19 = vld [vmem:[%s4267_s4 + $0xc8] sm:$0xff] }
 0x543   : > { %v3522_v24 = vpack.c.bf16 %v2750_v19, %v2749_v18 }
 0x544   : > { %v4155_v42 = vadd.f32 %v2605_v41, %v3780_v2 }
 0x545   : > { %3523 = vmatprep.subr.bf16.mxu1 %v3522_v24 }
 0x546   : > { %v2611_v0 = vsel %vm300_vm0, %v4155_v42, 0.0  ;;  %3525 = vmatpush3.bf16.msra.mxu1 %v3522_v24 }
 0x547   : > { %2612 = vadd.xlane.f32.xlu1 %v2611_v0  ;;  %3527 = vmatprep.subr.bf16.mxu1 %v3526_v26 }
 0x54a   : > { %3529 = vmatpush3.bf16.msra.mxu1 %v3526_v26 }
 0x5c9   : > { %v2610_v44 = vpop.xlane.xlu0 %2609 }
 0x5ca   : > { %v2614_v45 = vmul.f32 0.03125, %v2610_v44 }
 0x5cc   : > { %v2616_v46 = vsub.f32 %v4150_v30, %v2614_v45 }
 0x5ce   : > { %v2618_v47 = vmul.f32 %v2616_v46, %v2616_v46 }
 0x5d0   : > { %v2620_v48 = vsel %vm300_vm0, %v2618_v47, 0.0 }
 0x5d1   : > { %2621 = vadd.xlane.f32.xlu0 %v2620_v48 }
 0x5d4   : > { %v2613_v49 = vpop.xlane.xlu1 %2612 }
 0x5d5   : > { %v2615_v50 = vmul.f32 0.03125, %v2613_v49 }
 0x5d7   : > { %v2617_v51 = vsub.f32 %v4155_v42, %v2615_v50 }
 0x5d9   : > { %v2619_v52 = vmul.f32 %v2617_v51, %v2617_v51 }
 0x5db   : > { %v2623_v2 = vsel %vm300_vm0, %v2619_v52, 0.0 }
 0x5dc   : > { %2624 = vadd.xlane.f32.xlu1 %v2623_v2 }
 0x65e   : > { %v2622_v61 = vpop.xlane.xlu0 %2621 }
 0x65f   : > { %v2626_v62 = vmul.f32 0.03125, %v2622_v61 }
 0x661   : > { %v2628_v23 = vadd.f32 1e-05, %v2626_v62 }
 0x663   : > { %3609 = vrsqrt.f32 %v2628_v23 }
 0x669   : > { %v2625_v1 = vpop.xlane.xlu1 %2624 }
 0x66a   : > { %v2627_v3 = vmul.f32 0.03125, %v2625_v1 }
 0x66c   : > { %v2629_v5 = vadd.f32 1e-05, %v2627_v3 }
 0x66d   : > { %v3610_v6 = vpop.eup %3609 }
 0x66e   : > { %3611 = vrsqrt.f32 %v2629_v5  ;;  %v2632_v7 = vmul.f32 %v3610_v6, %v2616_v46  ;;  %v2755_v46 = vsub.s32 6, %v3830_v40 }
 0x670   : > { %v2638_v16 = vmul.f32 %v2637_v22, %v2632_v7  ;;  %v2756_v47 = vrot.slane %v3836_v43, %v2755_v46 }
 0x672   : > { %v2644_v17 = vadd.f32 %v2643_v60, %v2638_v16 }
 0x674   : > { %3388 = vmatprep.mubr.msk.f32.mxu0 %vm300_vm0, %v2644_v17 }
 0x678   : > { %v3612_v8 = vpop.eup %3611 }
 0x679   : > { %v2633_v9 = vmul.f32 %v3612_v8, %v2617_v51 }
 0x67b   : > { %v2639_v10 = vmul.f32 %v2637_v22, %v2633_v9 }
 0x67d   : > { %v2645_v11 = vadd.f32 %v2643_v60, %v2639_v10 }
 0x67f   : > { %3389 = vmatmul.mubr.msk.f32.vlgmr.msra.gmra.mrb[30].mxu0 %vm300_vm0, %v2645_v11 }
 0x752   : > { %v3390_v29 = vpop.f32.mrb[30].mxu0 }
 0x753   : > { %v2732_v31 = vadd.f32 %v3390_v29, %v2653_v28  ;;  %v2726_v32 = vpop.f32.mrb[31].mxu0 }
 0x754   : > { %v2727_v33 = vadd.f32 %v2726_v32, %v2653_v28 }
 0x755   : > { %v2738_v34 = vmul.f32 0.70710677, %v2732_v31  ;;  %v2736_v0 = vmul.f32 0.5, %v2732_v31 }
 0x756   : > { %v2737_v35 = vmul.f32 0.70710677, %v2727_v33  ;;  %v2735_v39 = vmul.f32 0.5, %v2727_v33 }
 0x757   : > { %3613 = verf.f32 %v2738_v34 }
 0x758   : > { %3615 = verf.f32 %v2737_v35 }
 0x761   : > { %v3614_v36 = vpop.eup %3613 }
 0x762   : > { %v3616_v37 = vpop.eup %3615  ;;  %v2742_v38 = vadd.f32 1.0, %v3614_v36 }
 0x763   : > { %v2741_v41 = vadd.f32 1.0, %v3616_v37 }
 0x764   : > { %v2744_v45 = vmul.f32 %v2742_v38, %v2736_v0 }
 0x765   : > { %v2743_v44 = vmul.f32 %v2741_v41, %v2735_v39 }
 0x767   : > { %3407 = vmatprep.mubr.msk.f32.mxu1 %vm2757_vm4, %v2743_v44 }
 0x768   : > { %3408 = vmatmul.mubr.msk.f32.vlgmr.msra.gmra.mrb[26].mxu1 %vm2757_vm4, %v2744_v45 }
 0x83b   : > { %v3409_v48 = vpop.f32.mrb[26].mxu1 }
 0x83c   : > { %v2836_v49 = vadd.f32 %v3409_v48, %v2756_v47  ;;  %v2830_v50 = vpop.f32.mrb[27].mxu1 }
 0x83d   : > { %v2831_v51 = vadd.f32 %v2830_v50, %v2756_v47 }
 0x83e   : > { %v2840_v52 = vadd.f32 %v2836_v49, %v4155_v42 }
 0x83f   : > { %v2839_v40 = vadd.f32 %v2831_v51, %v4150_v30 }
 0x840   : > { %2842 = vst.msk [vmem:[%s277_s12 + $0x8] sm:$0xff] %vm300_vm0, %v2840_v52 }
 0x841   : > { %2841 = vst.msk [vmem:[%s277_s12] sm:$0xff] %vm300_vm0, %v2839_v40 }
 0x842   : > { %3630 = shalt.err (!%p3627_p3)
}
 0x843   : > { %s3631_s26 = scalar_lea.hbm %s4215_s16, 256  ;;  %s3635_s9 = scalar_lea.hbm %s4269_s6, 512 }
 0x844   : > { %p3632_p4 = scmp.ne.s32.totalorder %s4215_s16, %s3631_s26  ;;  %p3636_p9 = scmp.lt.u32.totalorder %s4215_s16, %s4269_s6 }
 0x845   : > { %p3637_p10 = scmp.lt.u32.totalorder %s3635_s9, %s3631_s26  ;;  %p3639_p12 = scmp.lt.u32.totalorder %s3631_s26, %s4215_s16 }
 0x846   : > { %p3633_p7 = pnand %p3632_p4, %p3759_p5 }
 0x847   : > { %p3638_p11 = por %p3637_p10, %p3636_p9 }
 0x848   : > { %p3634_p8 = pneg %p3633_p7 }
 0x849   : > { %p3640_p13 = por %p3639_p12, %p3638_p11 }
 0x84b   : > { %p3641_p0 = pnand %p3640_p13, %p3634_p8 }
 0x84d   : > { %3644 = shalt.err (!%p3641_p0)
}
 0x84e   : > { %s3684_s14 = smov 128   ;;  %s3685_s15 = smov 8  }
 0x84f   : > { %3530 = dma.vmem_to_hbm [thread:$0]  (%p3759_p5), %s4217_s13, 256, %s4215_s16, %s4222_s25, %s3684_s14, %s3684_s14, %s3685_s15  }
 0x850 PF: > { %p3536_p1 = scmp.ge.s32.totalorder %s3679_s24, 2  ;;  %s2872_s10 = sand.u32 1, %s3667_s21  }
 0x851   : > { %s2873_s17 = scalar_lea.sflag [#allocation3], %s2872_s10 }
 0x852   : > { %p3533_p2 = pnand %p3536_p1, %p3763_p6 }
 0x854   : > { %3662 = dma.done.wait (!%p3533_p2), %s2873_s17, 256  }
 0x855   : > { %3664 = vsyncadd (!%p3533_p2), %s2873_s17, 4294967040  ;;  %p16_p3 = scmp.ge.s32.totalorder %s3746_s27, 4   ;;  %s4272_s21 = smov %s3671_s22 }
 0x856   : > { %s4273_s22 = smov %s3675_s23  ;;  %s4274_s23 = smov %s3757_s30 }
 0x857   : > { %s4275_s24 = smov %s3746_s27  ;;  %18 = sbr.rel (!%p16_p3) target bundleno = 3 (0x3), region = 85 }
 0x85e   :  { %2878 = vsyncpa [#allocation3], 1 }
 0x85f   :  { %2880 = vsyncpa [#allocation3 + $0x1], 1 }

</bundles_post_ra>
